<compile_context>
chip_gen: v5e
topology: v5e:2x2
jax: 0.10.0
libtpu: 0.0.40
codegen_flags: <defaults>
</compile_context>

<pallas_src>
import functools

import jax
import jax.numpy as jnp
from jax import lax
from jax.experimental import pallas as pl
from jax.experimental.pallas import tpu as pltpu


_SQRT_HALF = 0.7071067811865476


# ----------------------------- helpers ---------------------------------------

def _layernorm(x, w, b, eps=1e-5):
    """f32 LayerNorm over the last (channel) axis; w/b are (1, C) rows."""
    mu = jnp.mean(x, axis=-1, keepdims=True)
    xc = x - mu
    var = jnp.mean(xc * xc, axis=-1, keepdims=True)
    return xc * lax.rsqrt(var + eps) * w + b


def _gelu_exact(x):
    # matches torch.nn.GELU() default (erf-based, not tanh approximation)
    return 0.5 * x * (1.0 + lax.erf(x * _SQRT_HALF))


def _pick_row_tile(n, target=256):
    """Largest row tile <= target that divides n and is a multiple of 8,
    or the full axis when n is small / has no such divisor."""
    if n <= target:
        return n
    for t in range(target, 7, -1):
        if n % t == 0 and t % 8 == 0:
            return t
    return n


def _pick_hidden_chunk(hidden, target=1024):
    """Hidden-dim chunk for the MLP: full hidden when small, otherwise the
    largest multiple-of-128 divisor <= target (bounds live f32 intermediates)."""
    if hidden <= target:
        return hidden
    for t in range(target, 127, -128):
        if hidden % t == 0:
            return t
    return hidden


def _vmem_limit_bytes():
    """Scoped-VMEM budget: ~3/4 of physical VMEM (leaves headroom on v7x's
    64 MiB; ~96 MiB on v5e/v6e's 128 MiB), capped at 112 MiB."""
    cap = 64 * 1024 * 1024
    try:
        cap = int(pltpu.get_tpu_info().vmem_capacity_bytes)
    except Exception:
        pass
    return max(32 * 1024 * 1024, min(int(cap * 3 // 4), 112 * 1024 * 1024))


# ----------------------------- kernels ----------------------------------------

def qkv_kernel(x_ref, ln1_w_ref, ln1_b_ref, w_qkv_ref, b_qkv_ref,
               q_ref, k_ref, v_ref):
    """LayerNorm1 + fused QKV projection for one (batch, row-tile) block.

    A single (TR, C) x (C, 3C) bf16 MXU matmul (f32 accumulation) replaces the
    three separate q/k/v matmuls.  The 1/sqrt(D) attention scale is already
    folded into the q columns of w_qkv / b_qkv, and the k bias (identically
    zero in the reference) is baked into b_qkv as zeros.  Outputs stay in
    lane-dense (TR, C) layout.
    """
    c = q_ref.shape[-1]
    x = x_ref[0]                                                   # (TR, C) f32
    h = _layernorm(x, ln1_w_ref[...], ln1_b_ref[...]).astype(jnp.bfloat16)
    qkv = jnp.dot(h, w_qkv_ref[...],
                  preferred_element_type=jnp.float32) + b_qkv_ref[...]
    qkv = qkv.astype(jnp.bfloat16)                                 # (TR, 3C)
    q_ref[0] = qkv[:, 0:c]
    k_ref[0] = qkv[:, c:2 * c]
    v_ref[0] = qkv[:, 2 * c:3 * c]


def attn_proj_kernel(x_ref, q_ref, k_ref, v_ref, pw_ref, pb_ref, g1_ref,
                     y_ref, *, num_heads, head_dim):
    """Per-head softmax(q k^T) v fused with the output projection and the
    gamma_1 residual for one (batch, q-row-tile) block.

    Heads are split by static in-VMEM lane slices of the lane-dense (TR, C) /
    (N, C) tiles; the per-head context is immediately folded into the output
    projection (ctx_h @ proj_W[h*D:(h+1)*D, :]) and accumulated into a
    (TR, C) f32 accumulator, so ctx never goes back to HBM and the output
    store is lane-dense.  q is pre-scaled via weight folding.
    """
    H, D = num_heads, head_dim
    q = q_ref[0]                                                   # (TR, C) bf16
    k = k_ref[0]                                                   # (N,  C) bf16
    v = v_ref[0]                                                   # (N,  C) bf16
    acc = jnp.zeros((q.shape[0], pw_ref.shape[1]), jnp.float32)    # (TR, C)
    for h in range(H):
        lo = h * D
        q_h = q[:, lo:lo + D]                                      # (TR, D)
        k_h = k[:, lo:lo + D]                                      # (N,  D)
        v_h = v[:, lo:lo + D]                                      # (N,  D)
        s = lax.dot_general(q_h, k_h, (((1,), (1,)), ((), ())),
                            preferred_element_type=jnp.float32)    # (TR, N)
        m = jnp.max(s, axis=-1, keepdims=True)
        p = jnp.exp(s - m)
        l = jnp.sum(p, axis=-1, keepdims=True)
        ctx = jnp.dot(p.astype(jnp.bfloat16), v_h,
                      preferred_element_type=jnp.float32)          # (TR, D)
        # Normalize the small (TR, D) context (reciprocal goes to the EUP slot)
        # instead of the (TR, N) probabilities.
        ctx = ctx * pl.reciprocal(l, approx=True)
        # Fused output projection: accumulate this head's slice of proj.
        acc = acc + jnp.dot(ctx.astype(jnp.bfloat16),
                            pw_ref[lo:lo + D, :],
                            preferred_element_type=jnp.float32)    # (TR, C)
    attn_out = acc + pb_ref[...]
    y_ref[0] = x_ref[0] + g1_ref[...] * attn_out


def mlp_kernel(y_ref, ln2_w_ref, ln2_b_ref, fc1_w_ref, fc1_b_ref,
               fc2_w_ref, fc2_b_ref, g2_ref, o_ref, *, hidden_chunk):
    """LayerNorm2 + MLP (hidden dim processed in chunks) + gamma_2 residual."""
    y = y_ref[0]                                                   # (TR, C) f32
    h = _layernorm(y, ln2_w_ref[...], ln2_b_ref[...]).astype(jnp.bfloat16)
    hidden = fc1_w_ref.shape[1]
    acc = jnp.zeros((y.shape[0], o_ref.shape[-1]), jnp.float32)    # (TR, C)
    for c0 in range(0, hidden, hidden_chunk):
        t = jnp.dot(h, fc1_w_ref[:, c0:c0 + hidden_chunk],
                    preferred_element_type=jnp.float32)
        t = t + fc1_b_ref[:, c0:c0 + hidden_chunk]
        t = _gelu_exact(t).astype(jnp.bfloat16)                    # GELU in f32
        acc = acc + jnp.dot(t, fc2_w_ref[c0:c0 + hidden_chunk, :],
                            preferred_element_type=jnp.float32)
    mlp_out = acc + fc2_b_ref[...]
    o_ref[0] = y + g2_ref[...] * mlp_out


# ----------------------------- wrapper -----------------------------------------

def block_forward(x, params, *, num_heads, head_dim, row_tile=256):
    B, N, C = x.shape
    H, D = num_heads, head_dim
    assert H * D == C, "attn_head_dim=None => all_head_dim == dim"
    TR = _pick_row_tile(N, row_tile)
    NT = N // TR
    hidden = params["fc1_wT"].shape[1]
    hc = _pick_hidden_chunk(hidden)
    vmem_limit = _vmem_limit_bytes()

    def const_spec(a, single_buffer=False):
        nd = a.ndim
        if single_buffer:
            # Constant blocks across the grid: no need to double-buffer the big
            # weights (halves their resident VMEM footprint).
            return pl.BlockSpec(a.shape, lambda *_: (0,) * nd,
                                pipeline_mode=pl.Buffered(1))
        return pl.BlockSpec(a.shape, lambda *_: (0,) * nd)

    row_spec = pl.BlockSpec((1, TR, C), lambda b, i: (b, i, 0))
    full_seq_spec = pl.BlockSpec((1, N, C), lambda b, i: (b, 0, 0))

    # ---- kernel 1: LN1 + fused QKV projection (grid: batch x row tiles) -------
    q, k, v = pl.pallas_call(
        qkv_kernel,
        out_shape=tuple(jax.ShapeDtypeStruct((B, N, C), jnp.bfloat16)
                        for _ in range(3)),
        grid_spec=pltpu.PrefetchScalarGridSpec(
            num_scalar_prefetch=0,
            grid=(B, NT),
            in_specs=[row_spec,
                      const_spec(params["ln1_w"]), const_spec(params["ln1_b"]),
                      const_spec(params["w_qkv"], True),
                      const_spec(params["b_qkv"])],
            out_specs=(row_spec, row_spec, row_spec)),
        compiler_params=pltpu.CompilerParams(
            dimension_semantics=("parallel", "parallel"),
            vmem_limit_bytes=vmem_limit),
    )(x, params["ln1_w"], params["ln1_b"], params["w_qkv"], params["b_qkv"])

    # ---- kernel 2: attention + fused proj + gamma_1 residual ------------------
    y = pl.pallas_call(
        functools.partial(attn_proj_kernel, num_heads=H, head_dim=D),
        out_shape=jax.ShapeDtypeStruct((B, N, C), jnp.float32),
        grid_spec=pltpu.PrefetchScalarGridSpec(
            num_scalar_prefetch=0,
            grid=(B, NT),
            in_specs=[row_spec, row_spec, full_seq_spec, full_seq_spec,
                      const_spec(params["proj_wT"], True),
                      const_spec(params["proj_b"]), const_spec(params["g1"])],
            out_specs=row_spec),
        compiler_params=pltpu.CompilerParams(
            dimension_semantics=("parallel", "parallel"),
            vmem_limit_bytes=vmem_limit),
    )(x, q, k, v, params["proj_wT"], params["proj_b"], params["g1"])

    # ---- kernel 3: LN2 + MLP (chunked hidden) + gamma_2 residual ---------------
    out = pl.pallas_call(
        functools.partial(mlp_kernel, hidden_chunk=hc),
        out_shape=jax.ShapeDtypeStruct((B, N, C), jnp.float32),
        grid_spec=pltpu.PrefetchScalarGridSpec(
            num_scalar_prefetch=0,
            grid=(B, NT),
            in_specs=[row_spec,
                      const_spec(params["ln2_w"]), const_spec(params["ln2_b"]),
                      const_spec(params["fc1_wT"], True),
                      const_spec(params["fc1_b"]),
                      const_spec(params["fc2_wT"], True),
                      const_spec(params["fc2_b"]), const_spec(params["g2"])],
            out_specs=row_spec),
        compiler_params=pltpu.CompilerParams(
            dimension_semantics=("parallel", "parallel"),
            vmem_limit_bytes=vmem_limit),
    )(y, params["ln2_w"], params["ln2_b"], params["fc1_wT"], params["fc1_b"],
      params["fc2_wT"], params["fc2_b"], params["g2"])
    return out


# ------------------------- deterministic params --------------------------------

def init_block_params(key, dim, num_heads, mlp_ratio=4.0, init_values=1e-2):
    """Synthetic deterministic init matching Block.__init__ shapes
    (qkv_bias=True, qk_scale=None, cos_attn=False, init_values>0).
    Matmul weights are pre-transposed to (in, out), qkv fused into a single
    (dim, 3*dim) matrix with the 1/sqrt(head_dim) scale folded into the q
    columns/bias, and stored in bf16."""
    hidden = int(dim * mlp_ratio)
    head_dim = dim // num_heads
    scale = float(head_dim) ** -0.5
    ks = jax.random.split(key, 9)

    def rnd(k, shape):
        return 0.02 * jax.random.normal(k, shape, jnp.float32)

    # torch nn.Linear weights are (out, in); rows of qkv weight are [q; k; v]
    qkv_w = rnd(ks[0], (3 * dim, dim))
    q_bias = rnd(ks[1], (dim,))
    v_bias = rnd(ks[2], (dim,))          # k bias is zeros in Attention.forward
    proj_w = rnd(ks[3], (dim, dim))
    proj_b = rnd(ks[4], (dim,))
    fc1_w = rnd(ks[5], (hidden, dim))
    fc1_b = rnd(ks[6], (hidden,))
    fc2_w = rnd(ks[7], (dim, hidden))
    fc2_b = rnd(ks[8], (dim,))

    # Fused (dim, 3*dim) qkv weight, attention scale folded into the q columns.
    w_qkv = jnp.concatenate([qkv_w[0:dim].T * scale,
                             qkv_w[dim:2 * dim].T,
                             qkv_w[2 * dim:].T], axis=1)
    b_qkv = jnp.concatenate([q_bias * scale,
                             jnp.zeros((dim,), jnp.float32),
                             v_bias])

    row = lambda v: v.reshape(1, -1)     # 1-D params -> (1, n) lane rows
    wdt = jnp.bfloat16

    return {
        "ln1_w": row(jnp.ones((dim,), jnp.float32)),
        "ln1_b": row(jnp.zeros((dim,), jnp.float32)),
        "w_qkv": w_qkv.astype(wdt),                  # (dim, 3*dim)
        "b_qkv": row(b_qkv),                         # (1, 3*dim) f32
        "proj_wT": proj_w.T.astype(wdt),             # (dim, dim)
        "proj_b": row(proj_b),
        "ln2_w": row(jnp.ones((dim,), jnp.float32)),
        "ln2_b": row(jnp.zeros((dim,), jnp.float32)),
        "fc1_wT": fc1_w.T.astype(wdt),               # (dim, hidden)
        "fc1_b": row(fc1_b),
        "fc2_wT": fc2_w.T.astype(wdt),               # (hidden, dim)
        "fc2_b": row(fc2_b),
        "g1": row(init_values * jnp.ones((dim,), jnp.float32)),
        "g2": row(init_values * jnp.ones((dim,), jnp.float32)),
    }


# ------------------------- pure-JAX reference (f32) -----------------------------

def block_reference(x, params, *, num_heads, head_dim):
    B, N, C = x.shape
    H, D = num_heads, head_dim
    f32 = jnp.float32

    def ln(t, w, b, eps=1e-5):
        mu = jnp.mean(t, axis=-1, keepdims=True)
        tc = t - mu
        var = jnp.mean(tc * tc, axis=-1, keepdims=True)
        return tc / jnp.sqrt(var + eps) * w + b

    h = ln(x, params["ln1_w"], params["ln1_b"])
    qkv = h @ params["w_qkv"].astype(f32) + params["b_qkv"]   # scale pre-folded
    q, k, v = qkv[..., 0:C], qkv[..., C:2 * C], qkv[..., 2 * C:3 * C]
    qh = q.reshape(B, N, H, D).transpose(0, 2, 1, 3)
    kh = k.reshape(B, N, H, D).transpose(0, 2, 1, 3)
    vh = v.reshape(B, N, H, D).transpose(0, 2, 1, 3)
    s = jnp.einsum("bhqd,bhkd->bhqk", qh, kh)
    p = jax.nn.softmax(s, axis=-1)
    ctx = jnp.einsum("bhqk,bhkd->bhqd", p, vh)
    ctx = ctx.transpose(0, 2, 1, 3).reshape(B, N, C)
    attn_out = ctx @ params["proj_wT"].astype(f32) + params["proj_b"]
    y = x + params["g1"] * attn_out
    h2 = ln(y, params["ln2_w"], params["ln2_b"])
    h2 = h2 @ params["fc1_wT"].astype(f32) + params["fc1_b"]
    h2 = 0.5 * h2 * (1.0 + lax.erf(h2 * _SQRT_HALF))
    mlp = h2 @ params["fc2_wT"].astype(f32) + params["fc2_b"]
    return y + params["g2"] * mlp


# --------------------------------- main ------------------------------------------

if __name__ == "__main__":
    B, N, dim = 2, 8, 32
    num_heads = 4
    head_dim = dim // num_heads           # attn_head_dim=None -> dim // num_heads

    key = jax.random.PRNGKey(0)
    kx, kp = jax.random.split(key)
    x = jax.random.normal(kx, (B, N, dim), jnp.float32)
    params = init_block_params(kp, dim, num_heads, mlp_ratio=4.0,
                               init_values=1e-2)

    fwd = jax.jit(functools.partial(block_forward, num_heads=num_heads,
                                    head_dim=head_dim))
    out = fwd(x, params)
    jax.block_until_ready(out)
    assert out.shape == (B, N, dim)

    ref = block_reference(x, params, num_heads=num_heads, head_dim=head_dim)
    err = float(jnp.max(jnp.abs(out - ref)))
    assert err < 1e-2, f"kernel vs reference max abs err {err}"
    print("KERNEL_OK")
</pallas_src>

<mosaic_0001>
module attributes {stable_mosaic.version = 11 : i64} {
  func.func @qkv_kernel(%arg0: i32, %arg1: i32, %arg2: memref<1x8x32xf32, #tpu.memory_space<vmem>>, %arg3: memref<1x32xf32, #tpu.memory_space<vmem>>, %arg4: memref<1x32xf32, #tpu.memory_space<vmem>>, %arg5: memref<32x96xbf16, #tpu.memory_space<vmem>>, %arg6: memref<1x96xf32, #tpu.memory_space<vmem>>, %arg7: memref<1x8x32xbf16, #tpu.memory_space<vmem>>, %arg8: memref<1x8x32xbf16, #tpu.memory_space<vmem>>, %arg9: memref<1x8x32xbf16, #tpu.memory_space<vmem>>) attributes {dimension_semantics = [#tpu.dimension_semantics<parallel>, #tpu.dimension_semantics<parallel>], iteration_bounds = array<i64: 2, 1>, scalar_prefetch = 0 : i64, scratch_operands = 0 : i64, tpu.core_type = #tpu.core_type<tc>, window_params = [{transform_indices = @transform_0, window_bounds = array<i64: 1, 8, 32>}, {pipeline_mode = #tpu.pipeline_mode<synchronous>, transform_indices = @transform_1, window_bounds = array<i64: 1, 32>}, {pipeline_mode = #tpu.pipeline_mode<synchronous>, transform_indices = @transform_2, window_bounds = array<i64: 1, 32>}, {pipeline_mode = #tpu.pipeline_mode<synchronous>, transform_indices = @transform_3, window_bounds = array<i64: 32, 96>}, {pipeline_mode = #tpu.pipeline_mode<synchronous>, transform_indices = @transform_4, window_bounds = array<i64: 1, 96>}, {transform_indices = @transform_5, window_bounds = array<i64: 1, 8, 32>}, {transform_indices = @transform_6, window_bounds = array<i64: 1, 8, 32>}, {transform_indices = @transform_7, window_bounds = array<i64: 1, 8, 32>}]} {
    %c0 = arith.constant 0 : index
    %c0_0 = arith.constant 0 : index
    %c0_1 = arith.constant 0 : index
    %0 = vector.load %arg2[%c0, %c0_0, %c0_1] : memref<1x8x32xf32, #tpu.memory_space<vmem>>, vector<1x8x32xf32>
    %1 = vector.shape_cast %0 : vector<1x8x32xf32> to vector<8x32xf32>
    %c0_2 = arith.constant 0 : index
    %c0_3 = arith.constant 0 : index
    %2 = vector.load %arg3[%c0_2, %c0_3] : memref<1x32xf32, #tpu.memory_space<vmem>>, vector<1x32xf32>
    %c0_4 = arith.constant 0 : index
    %c0_5 = arith.constant 0 : index
    %3 = vector.load %arg4[%c0_4, %c0_5] : memref<1x32xf32, #tpu.memory_space<vmem>>, vector<1x32xf32>
    %cst = arith.constant dense<0.000000e+00> : vector<8xf32>
    %4 = vector.multi_reduction <add>, %1, %cst [1] : vector<8x32xf32> to vector<8xf32>
    %5 = vector.shape_cast %4 : vector<8xf32> to vector<8x1xf32>
    %cst_6 = arith.constant 3.200000e+01 : f32
    %6 = vector.broadcast %cst_6 : f32 to vector<8x1xf32>
    %7 = arith.divf %5, %6 : vector<8x1xf32>
    %8 = vector.broadcast %7 : vector<8x1xf32> to vector<8x32xf32>
    %9 = arith.subf %1, %8 : vector<8x32xf32>
    %10 = arith.mulf %9, %9 : vector<8x32xf32>
    %cst_7 = arith.constant dense<0.000000e+00> : vector<8xf32>
    %11 = vector.multi_reduction <add>, %10, %cst_7 [1] : vector<8x32xf32> to vector<8xf32>
    %12 = vector.shape_cast %11 : vector<8xf32> to vector<8x1xf32>
    %cst_8 = arith.constant 3.200000e+01 : f32
    %13 = vector.broadcast %cst_8 : f32 to vector<8x1xf32>
    %14 = arith.divf %12, %13 : vector<8x1xf32>
    %cst_9 = arith.constant 9.99999974E-6 : f32
    %15 = vector.broadcast %cst_9 : f32 to vector<8x1xf32>
    %16 = arith.addf %14, %15 : vector<8x1xf32>
    %17 = math.rsqrt %16 : vector<8x1xf32>
    %18 = vector.broadcast %17 : vector<8x1xf32> to vector<8x32xf32>
    %19 = arith.mulf %9, %18 : vector<8x32xf32>
    %20 = vector.broadcast %2 : vector<1x32xf32> to vector<8x32xf32>
    %21 = arith.mulf %19, %20 : vector<8x32xf32>
    %22 = vector.broadcast %3 : vector<1x32xf32> to vector<8x32xf32>
    %23 = arith.addf %21, %22 : vector<8x32xf32>
    %24 = arith.truncf %23 : vector<8x32xf32> to vector<8x32xbf16>
    %c0_10 = arith.constant 0 : index
    %c0_11 = arith.constant 0 : index
    %25 = vector.load %arg5[%c0_10, %c0_11] : memref<32x96xbf16, #tpu.memory_space<vmem>>, vector<32x96xbf16>
    %cst_12 = arith.constant dense<0.000000e+00> : vector<8x96xf32>
    %26 = tpu.matmul %24, %25, %cst_12 {dimension_numbers = #tpu.dot_dimension_numbers<[1], [0], [0], [1], [0, 0, 1, 1], [], []>} : vector<8x32xbf16>, vector<32x96xbf16>, vector<8x96xf32> -> vector<8x96xf32>
    %c0_13 = arith.constant 0 : index
    %c0_14 = arith.constant 0 : index
    %27 = vector.load %arg6[%c0_13, %c0_14] : memref<1x96xf32, #tpu.memory_space<vmem>>, vector<1x96xf32>
    %28 = vector.broadcast %27 : vector<1x96xf32> to vector<8x96xf32>
    %29 = arith.addf %26, %28 : vector<8x96xf32>
    %30 = arith.truncf %29 : vector<8x96xf32> to vector<8x96xbf16>
    %31 = vector.extract_strided_slice %30 {offsets = [0, 0], sizes = [8, 32], strides = [1, 1]} : vector<8x96xbf16> to vector<8x32xbf16>
    %c0_15 = arith.constant 0 : index
    %c0_16 = arith.constant 0 : index
    %c0_17 = arith.constant 0 : index
    %32 = vector.load %arg7[%c0_15, %c0_16, %c0_17] : memref<1x8x32xbf16, #tpu.memory_space<vmem>>, vector<1x8x32xbf16>
    %33 = vector.shape_cast %32 : vector<1x8x32xbf16> to vector<8x32xbf16>
    %34 = vector.shape_cast %31 : vector<8x32xbf16> to vector<1x8x32xbf16>
    tpu.vector_store %arg7[%c0_15, %c0_16, %c0_17], %34 {strides = array<i32>} : memref<1x8x32xbf16, #tpu.memory_space<vmem>>, vector<1x8x32xbf16>,
    %35 = vector.extract_strided_slice %30 {offsets = [0, 32], sizes = [8, 32], strides = [1, 1]} : vector<8x96xbf16> to vector<8x32xbf16>
    %c0_18 = arith.constant 0 : index
    %c0_19 = arith.constant 0 : index
    %c0_20 = arith.constant 0 : index
    %36 = vector.load %arg8[%c0_18, %c0_19, %c0_20] : memref<1x8x32xbf16, #tpu.memory_space<vmem>>, vector<1x8x32xbf16>
    %37 = vector.shape_cast %36 : vector<1x8x32xbf16> to vector<8x32xbf16>
    %38 = vector.shape_cast %35 : vector<8x32xbf16> to vector<1x8x32xbf16>
    tpu.vector_store %arg8[%c0_18, %c0_19, %c0_20], %38 {strides = array<i32>} : memref<1x8x32xbf16, #tpu.memory_space<vmem>>, vector<1x8x32xbf16>,
    %39 = vector.extract_strided_slice %30 {offsets = [0, 64], sizes = [8, 32], strides = [1, 1]} : vector<8x96xbf16> to vector<8x32xbf16>
    %c0_21 = arith.constant 0 : index
    %c0_22 = arith.constant 0 : index
    %c0_23 = arith.constant 0 : index
    %40 = vector.load %arg9[%c0_21, %c0_22, %c0_23] : memref<1x8x32xbf16, #tpu.memory_space<vmem>>, vector<1x8x32xbf16>
    %41 = vector.shape_cast %40 : vector<1x8x32xbf16> to vector<8x32xbf16>
    %42 = vector.shape_cast %39 : vector<8x32xbf16> to vector<1x8x32xbf16>
    tpu.vector_store %arg9[%c0_21, %c0_22, %c0_23], %42 {strides = array<i32>} : memref<1x8x32xbf16, #tpu.memory_space<vmem>>, vector<1x8x32xbf16>,
    return
  }
  func.func @transform_0(%arg0: i32, %arg1: i32) -> (i32, i32, i32) {
    %c0_i32 = arith.constant 0 : i32
    %c0_i32_0 = arith.constant 0 : i32
    return %arg0, %arg1, %c0_i32 : i32, i32, i32
  }
  func.func @transform_1(%arg0: i32, %arg1: i32) -> (i32, i32) {
    %c0_i32 = arith.constant 0 : i32
    %c0_i32_0 = arith.constant 0 : i32
    %c0_i32_1 = arith.constant 0 : i32
    return %c0_i32, %c0_i32_0 : i32, i32
  }
  func.func @transform_2(%arg0: i32, %arg1: i32) -> (i32, i32) {
    %c0_i32 = arith.constant 0 : i32
    %c0_i32_0 = arith.constant 0 : i32
    %c0_i32_1 = arith.constant 0 : i32
    return %c0_i32, %c0_i32_0 : i32, i32
  }
  func.func @transform_3(%arg0: i32, %arg1: i32) -> (i32, i32) {
    %c0_i32 = arith.constant 0 : i32
    %c0_i32_0 = arith.constant 0 : i32
    %c0_i32_1 = arith.constant 0 : i32
    return %c0_i32, %c0_i32_0 : i32, i32
  }
  func.func @transform_4(%arg0: i32, %arg1: i32) -> (i32, i32) {
    %c0_i32 = arith.constant 0 : i32
    %c0_i32_0 = arith.constant 0 : i32
    %c0_i32_1 = arith.constant 0 : i32
    return %c0_i32, %c0_i32_0 : i32, i32
  }
  func.func @transform_5(%arg0: i32, %arg1: i32) -> (i32, i32, i32) {
    %c0_i32 = arith.constant 0 : i32
    %c0_i32_0 = arith.constant 0 : i32
    return %arg0, %arg1, %c0_i32 : i32, i32, i32
  }
  func.func @transform_6(%arg0: i32, %arg1: i32) -> (i32, i32, i32) {
    %c0_i32 = arith.constant 0 : i32
    %c0_i32_0 = arith.constant 0 : i32
    return %arg0, %arg1, %c0_i32 : i32, i32, i32
  }
  func.func @transform_7(%arg0: i32, %arg1: i32) -> (i32, i32, i32) {
    %c0_i32 = arith.constant 0 : i32
    %c0_i32_0 = arith.constant 0 : i32
    return %arg0, %arg1, %c0_i32 : i32, i32, i32
  }
}

module attributes {stable_mosaic.version = 11 : i64} {
  func.func @attn_proj_kernel(%arg0: i32, %arg1: i32, %arg2: memref<1x8x32xf32, #tpu.memory_space<vmem>>, %arg3: memref<1x8x32xbf16, #tpu.memory_space<vmem>>, %arg4: memref<1x8x32xbf16, #tpu.memory_space<vmem>>, %arg5: memref<1x8x32xbf16, #tpu.memory_space<vmem>>, %arg6: memref<32x32xbf16, #tpu.memory_space<vmem>>, %arg7: memref<1x32xf32, #tpu.memory_space<vmem>>, %arg8: memref<1x32xf32, #tpu.memory_space<vmem>>, %arg9: memref<1x8x32xf32, #tpu.memory_space<vmem>>) attributes {dimension_semantics = [#tpu.dimension_semantics<parallel>, #tpu.dimension_semantics<parallel>], iteration_bounds = array<i64: 2, 1>, scalar_prefetch = 0 : i64, scratch_operands = 0 : i64, tpu.core_type = #tpu.core_type<tc>, window_params = [{transform_indices = @transform_0, window_bounds = array<i64: 1, 8, 32>}, {transform_indices = @transform_1, window_bounds = array<i64: 1, 8, 32>}, {transform_indices = @transform_2, window_bounds = array<i64: 1, 8, 32>}, {transform_indices = @transform_3, window_bounds = array<i64: 1, 8, 32>}, {pipeline_mode = #tpu.pipeline_mode<synchronous>, transform_indices = @transform_4, window_bounds = array<i64: 32, 32>}, {pipeline_mode = #tpu.pipeline_mode<synchronous>, transform_indices = @transform_5, window_bounds = array<i64: 1, 32>}, {pipeline_mode = #tpu.pipeline_mode<synchronous>, transform_indices = @transform_6, window_bounds = array<i64: 1, 32>}, {transform_indices = @transform_7, window_bounds = array<i64: 1, 8, 32>}]} {
    %c0 = arith.constant 0 : index
    %c0_0 = arith.constant 0 : index
    %c0_1 = arith.constant 0 : index
    %0 = vector.load %arg3[%c0, %c0_0, %c0_1] : memref<1x8x32xbf16, #tpu.memory_space<vmem>>, vector<1x8x32xbf16>
    %1 = vector.shape_cast %0 : vector<1x8x32xbf16> to vector<8x32xbf16>
    %c0_2 = arith.constant 0 : index
    %c0_3 = arith.constant 0 : index
    %c0_4 = arith.constant 0 : index
    %2 = vector.load %arg4[%c0_2, %c0_3, %c0_4] : memref<1x8x32xbf16, #tpu.memory_space<vmem>>, vector<1x8x32xbf16>
    %3 = vector.shape_cast %2 : vector<1x8x32xbf16> to vector<8x32xbf16>
    %c0_5 = arith.constant 0 : index
    %c0_6 = arith.constant 0 : index
    %c0_7 = arith.constant 0 : index
    %4 = vector.load %arg5[%c0_5, %c0_6, %c0_7] : memref<1x8x32xbf16, #tpu.memory_space<vmem>>, vector<1x8x32xbf16>
    %5 = vector.shape_cast %4 : vector<1x8x32xbf16> to vector<8x32xbf16>
    %cst = arith.constant 0.000000e+00 : f32
    %6 = vector.broadcast %cst : f32 to vector<8x32xf32>
    %7 = vector.extract_strided_slice %1 {offsets = [0, 0], sizes = [8, 8], strides = [1, 1]} : vector<8x32xbf16> to vector<8x8xbf16>
    %8 = vector.extract_strided_slice %3 {offsets = [0, 0], sizes = [8, 8], strides = [1, 1]} : vector<8x32xbf16> to vector<8x8xbf16>
    %9 = vector.extract_strided_slice %5 {offsets = [0, 0], sizes = [8, 8], strides = [1, 1]} : vector<8x32xbf16> to vector<8x8xbf16>
    %cst_8 = arith.constant dense<0.000000e+00> : vector<8x8xf32>
    %10 = tpu.matmul %7, %8, %cst_8 {dimension_numbers = #tpu.dot_dimension_numbers<[1], [1], [0], [0], [0, 0, 1, 0], [], []>} : vector<8x8xbf16>, vector<8x8xbf16>, vector<8x8xf32> -> vector<8x8xf32>
    %cst_9 = arith.constant dense<0xFF800000> : vector<8xf32>
    %11 = vector.multi_reduction <maximumf>, %10, %cst_9 [1] : vector<8x8xf32> to vector<8xf32>
    %12 = vector.shape_cast %11 : vector<8xf32> to vector<8x1xf32>
    %13 = vector.broadcast %12 : vector<8x1xf32> to vector<8x8xf32>
    %14 = arith.subf %10, %13 : vector<8x8xf32>
    %15 = math.exp %14 : vector<8x8xf32>
    %cst_10 = arith.constant dense<0.000000e+00> : vector<8xf32>
    %16 = vector.multi_reduction <add>, %15, %cst_10 [1] : vector<8x8xf32> to vector<8xf32>
    %17 = vector.shape_cast %16 : vector<8xf32> to vector<8x1xf32>
    %18 = arith.truncf %15 : vector<8x8xf32> to vector<8x8xbf16>
    %cst_11 = arith.constant dense<0.000000e+00> : vector<8x8xf32>
    %19 = tpu.matmul %18, %9, %cst_11 {dimension_numbers = #tpu.dot_dimension_numbers<[1], [0], [0], [1], [0, 0, 1, 1], [], []>} : vector<8x8xbf16>, vector<8x8xbf16>, vector<8x8xf32> -> vector<8x8xf32>
    %20 = tpu.reciprocal %17 {approx = true} : vector<8x1xf32> -> vector<8x1xf32>
    %21 = vector.broadcast %20 : vector<8x1xf32> to vector<8x8xf32>
    %22 = arith.mulf %19, %21 : vector<8x8xf32>
    %23 = arith.truncf %22 : vector<8x8xf32> to vector<8x8xbf16>
    %c0_12 = arith.constant 0 : index
    %c0_13 = arith.constant 0 : index
    %24 = vector.load %arg6[%c0_12, %c0_13] : memref<32x32xbf16, #tpu.memory_space<vmem>>, vector<8x32xbf16>
    %cst_14 = arith.constant dense<0.000000e+00> : vector<8x32xf32>
    %25 = tpu.matmul %23, %24, %cst_14 {dimension_numbers = #tpu.dot_dimension_numbers<[1], [0], [0], [1], [0, 0, 1, 1], [], []>} : vector<8x8xbf16>, vector<8x32xbf16>, vector<8x32xf32> -> vector<8x32xf32>
    %26 = arith.addf %6, %25 : vector<8x32xf32>
    %27 = vector.extract_strided_slice %1 {offsets = [0, 8], sizes = [8, 8], strides = [1, 1]} : vector<8x32xbf16> to vector<8x8xbf16>
    %28 = vector.extract_strided_slice %3 {offsets = [0, 8], sizes = [8, 8], strides = [1, 1]} : vector<8x32xbf16> to vector<8x8xbf16>
    %29 = vector.extract_strided_slice %5 {offsets = [0, 8], sizes = [8, 8], strides = [1, 1]} : vector<8x32xbf16> to vector<8x8xbf16>
    %cst_15 = arith.constant dense<0.000000e+00> : vector<8x8xf32>
    %30 = tpu.matmul %27, %28, %cst_15 {dimension_numbers = #tpu.dot_dimension_numbers<[1], [1], [0], [0], [0, 0, 1, 0], [], []>} : vector<8x8xbf16>, vector<8x8xbf16>, vector<8x8xf32> -> vector<8x8xf32>
    %cst_16 = arith.constant dense<0xFF800000> : vector<8xf32>
    %31 = vector.multi_reduction <maximumf>, %30, %cst_16 [1] : vector<8x8xf32> to vector<8xf32>
    %32 = vector.shape_cast %31 : vector<8xf32> to vector<8x1xf32>
    %33 = vector.broadcast %32 : vector<8x1xf32> to vector<8x8xf32>
    %34 = arith.subf %30, %33 : vector<8x8xf32>
    %35 = math.exp %34 : vector<8x8xf32>
    %cst_17 = arith.constant dense<0.000000e+00> : vector<8xf32>
    %36 = vector.multi_reduction <add>, %35, %cst_17 [1] : vector<8x8xf32> to vector<8xf32>
    %37 = vector.shape_cast %36 : vector<8xf32> to vector<8x1xf32>
    %38 = arith.truncf %35 : vector<8x8xf32> to vector<8x8xbf16>
    %cst_18 = arith.constant dense<0.000000e+00> : vector<8x8xf32>
    %39 = tpu.matmul %38, %29, %cst_18 {dimension_numbers = #tpu.dot_dimension_numbers<[1], [0], [0], [1], [0, 0, 1, 1], [], []>} : vector<8x8xbf16>, vector<8x8xbf16>, vector<8x8xf32> -> vector<8x8xf32>
    %40 = tpu.reciprocal %37 {approx = true} : vector<8x1xf32> -> vector<8x1xf32>
    %41 = vector.broadcast %40 : vector<8x1xf32> to vector<8x8xf32>
    %42 = arith.mulf %39, %41 : vector<8x8xf32>
    %43 = arith.truncf %42 : vector<8x8xf32> to vector<8x8xbf16>
    %c8 = arith.constant 8 : index
    %c0_19 = arith.constant 0 : index
    %44 = vector.load %arg6[%c8, %c0_19] : memref<32x32xbf16, #tpu.memory_space<vmem>>, vector<8x32xbf16>
    %cst_20 = arith.constant dense<0.000000e+00> : vector<8x32xf32>
    %45 = tpu.matmul %43, %44, %cst_20 {dimension_numbers = #tpu.dot_dimension_numbers<[1], [0], [0], [1], [0, 0, 1, 1], [], []>} : vector<8x8xbf16>, vector<8x32xbf16>, vector<8x32xf32> -> vector<8x32xf32>
    %46 = arith.addf %26, %45 : vector<8x32xf32>
    %47 = vector.extract_strided_slice %1 {offsets = [0, 16], sizes = [8, 8], strides = [1, 1]} : vector<8x32xbf16> to vector<8x8xbf16>
    %48 = vector.extract_strided_slice %3 {offsets = [0, 16], sizes = [8, 8], strides = [1, 1]} : vector<8x32xbf16> to vector<8x8xbf16>
    %49 = vector.extract_strided_slice %5 {offsets = [0, 16], sizes = [8, 8], strides = [1, 1]} : vector<8x32xbf16> to vector<8x8xbf16>
    %cst_21 = arith.constant dense<0.000000e+00> : vector<8x8xf32>
    %50 = tpu.matmul %47, %48, %cst_21 {dimension_numbers = #tpu.dot_dimension_numbers<[1], [1], [0], [0], [0, 0, 1, 0], [], []>} : vector<8x8xbf16>, vector<8x8xbf16>, vector<8x8xf32> -> vector<8x8xf32>
    %cst_22 = arith.constant dense<0xFF800000> : vector<8xf32>
    %51 = vector.multi_reduction <maximumf>, %50, %cst_22 [1] : vector<8x8xf32> to vector<8xf32>
    %52 = vector.shape_cast %51 : vector<8xf32> to vector<8x1xf32>
    %53 = vector.broadcast %52 : vector<8x1xf32> to vector<8x8xf32>
    %54 = arith.subf %50, %53 : vector<8x8xf32>
    %55 = math.exp %54 : vector<8x8xf32>
    %cst_23 = arith.constant dense<0.000000e+00> : vector<8xf32>
    %56 = vector.multi_reduction <add>, %55, %cst_23 [1] : vector<8x8xf32> to vector<8xf32>
    %57 = vector.shape_cast %56 : vector<8xf32> to vector<8x1xf32>
    %58 = arith.truncf %55 : vector<8x8xf32> to vector<8x8xbf16>
    %cst_24 = arith.constant dense<0.000000e+00> : vector<8x8xf32>
    %59 = tpu.matmul %58, %49, %cst_24 {dimension_numbers = #tpu.dot_dimension_numbers<[1], [0], [0], [1], [0, 0, 1, 1], [], []>} : vector<8x8xbf16>, vector<8x8xbf16>, vector<8x8xf32> -> vector<8x8xf32>
    %60 = tpu.reciprocal %57 {approx = true} : vector<8x1xf32> -> vector<8x1xf32>
    %61 = vector.broadcast %60 : vector<8x1xf32> to vector<8x8xf32>
    %62 = arith.mulf %59, %61 : vector<8x8xf32>
    %63 = arith.truncf %62 : vector<8x8xf32> to vector<8x8xbf16>
    %c16 = arith.constant 16 : index
    %c0_25 = arith.constant 0 : index
    %64 = vector.load %arg6[%c16, %c0_25] : memref<32x32xbf16, #tpu.memory_space<vmem>>, vector<8x32xbf16>
    %cst_26 = arith.constant dense<0.000000e+00> : vector<8x32xf32>
    %65 = tpu.matmul %63, %64, %cst_26 {dimension_numbers = #tpu.dot_dimension_numbers<[1], [0], [0], [1], [0, 0, 1, 1], [], []>} : vector<8x8xbf16>, vector<8x32xbf16>, vector<8x32xf32> -> vector<8x32xf32>
    %66 = arith.addf %46, %65 : vector<8x32xf32>
    %67 = vector.extract_strided_slice %1 {offsets = [0, 24], sizes = [8, 8], strides = [1, 1]} : vector<8x32xbf16> to vector<8x8xbf16>
    %68 = vector.extract_strided_slice %3 {offsets = [0, 24], sizes = [8, 8], strides = [1, 1]} : vector<8x32xbf16> to vector<8x8xbf16>
    %69 = vector.extract_strided_slice %5 {offsets = [0, 24], sizes = [8, 8], strides = [1, 1]} : vector<8x32xbf16> to vector<8x8xbf16>
    %cst_27 = arith.constant dense<0.000000e+00> : vector<8x8xf32>
    %70 = tpu.matmul %67, %68, %cst_27 {dimension_numbers = #tpu.dot_dimension_numbers<[1], [1], [0], [0], [0, 0, 1, 0], [], []>} : vector<8x8xbf16>, vector<8x8xbf16>, vector<8x8xf32> -> vector<8x8xf32>
    %cst_28 = arith.constant dense<0xFF800000> : vector<8xf32>
    %71 = vector.multi_reduction <maximumf>, %70, %cst_28 [1] : vector<8x8xf32> to vector<8xf32>
    %72 = vector.shape_cast %71 : vector<8xf32> to vector<8x1xf32>
    %73 = vector.broadcast %72 : vector<8x1xf32> to vector<8x8xf32>
    %74 = arith.subf %70, %73 : vector<8x8xf32>
    %75 = math.exp %74 : vector<8x8xf32>
    %cst_29 = arith.constant dense<0.000000e+00> : vector<8xf32>
    %76 = vector.multi_reduction <add>, %75, %cst_29 [1] : vector<8x8xf32> to vector<8xf32>
    %77 = vector.shape_cast %76 : vector<8xf32> to vector<8x1xf32>
    %78 = arith.truncf %75 : vector<8x8xf32> to vector<8x8xbf16>
    %cst_30 = arith.constant dense<0.000000e+00> : vector<8x8xf32>
    %79 = tpu.matmul %78, %69, %cst_30 {dimension_numbers = #tpu.dot_dimension_numbers<[1], [0], [0], [1], [0, 0, 1, 1], [], []>} : vector<8x8xbf16>, vector<8x8xbf16>, vector<8x8xf32> -> vector<8x8xf32>
    %80 = tpu.reciprocal %77 {approx = true} : vector<8x1xf32> -> vector<8x1xf32>
    %81 = vector.broadcast %80 : vector<8x1xf32> to vector<8x8xf32>
    %82 = arith.mulf %79, %81 : vector<8x8xf32>
    %83 = arith.truncf %82 : vector<8x8xf32> to vector<8x8xbf16>
    %c24 = arith.constant 24 : index
    %c0_31 = arith.constant 0 : index
    %84 = vector.load %arg6[%c24, %c0_31] : memref<32x32xbf16, #tpu.memory_space<vmem>>, vector<8x32xbf16>
    %cst_32 = arith.constant dense<0.000000e+00> : vector<8x32xf32>
    %85 = tpu.matmul %83, %84, %cst_32 {dimension_numbers = #tpu.dot_dimension_numbers<[1], [0], [0], [1], [0, 0, 1, 1], [], []>} : vector<8x8xbf16>, vector<8x32xbf16>, vector<8x32xf32> -> vector<8x32xf32>
    %86 = arith.addf %66, %85 : vector<8x32xf32>
    %c0_33 = arith.constant 0 : index
    %c0_34 = arith.constant 0 : index
    %87 = vector.load %arg7[%c0_33, %c0_34] : memref<1x32xf32, #tpu.memory_space<vmem>>, vector<1x32xf32>
    %88 = vector.broadcast %87 : vector<1x32xf32> to vector<8x32xf32>
    %89 = arith.addf %86, %88 : vector<8x32xf32>
    %c0_35 = arith.constant 0 : index
    %c0_36 = arith.constant 0 : index
    %c0_37 = arith.constant 0 : index
    %90 = vector.load %arg2[%c0_35, %c0_36, %c0_37] : memref<1x8x32xf32, #tpu.memory_space<vmem>>, vector<1x8x32xf32>
    %91 = vector.shape_cast %90 : vector<1x8x32xf32> to vector<8x32xf32>
    %c0_38 = arith.constant 0 : index
    %c0_39 = arith.constant 0 : index
    %92 = vector.load %arg8[%c0_38, %c0_39] : memref<1x32xf32, #tpu.memory_space<vmem>>, vector<1x32xf32>
    %93 = vector.broadcast %92 : vector<1x32xf32> to vector<8x32xf32>
    %94 = arith.mulf %93, %89 : vector<8x32xf32>
    %95 = arith.addf %91, %94 : vector<8x32xf32>
    %c0_40 = arith.constant 0 : index
    %c0_41 = arith.constant 0 : index
    %c0_42 = arith.constant 0 : index
    %96 = vector.load %arg9[%c0_40, %c0_41, %c0_42] : memref<1x8x32xf32, #tpu.memory_space<vmem>>, vector<1x8x32xf32>
    %97 = vector.shape_cast %96 : vector<1x8x32xf32> to vector<8x32xf32>
    %98 = vector.shape_cast %95 : vector<8x32xf32> to vector<1x8x32xf32>
    tpu.vector_store %arg9[%c0_40, %c0_41, %c0_42], %98 {strides = array<i32>} : memref<1x8x32xf32, #tpu.memory_space<vmem>>, vector<1x8x32xf32>,
    return
  }
  func.func @transform_0(%arg0: i32, %arg1: i32) -> (i32, i32, i32) {
    %c0_i32 = arith.constant 0 : i32
    %c0_i32_0 = arith.constant 0 : i32
    return %arg0, %arg1, %c0_i32 : i32, i32, i32
  }
  func.func @transform_1(%arg0: i32, %arg1: i32) -> (i32, i32, i32) {
    %c0_i32 = arith.constant 0 : i32
    %c0_i32_0 = arith.constant 0 : i32
    return %arg0, %arg1, %c0_i32 : i32, i32, i32
  }
  func.func @transform_2(%arg0: i32, %arg1: i32) -> (i32, i32, i32) {
    %c0_i32 = arith.constant 0 : i32
    %c0_i32_0 = arith.constant 0 : i32
    %c0_i32_1 = arith.constant 0 : i32
    return %arg0, %c0_i32, %c0_i32_0 : i32, i32, i32
  }
  func.func @transform_3(%arg0: i32, %arg1: i32) -> (i32, i32, i32) {
    %c0_i32 = arith.constant 0 : i32
    %c0_i32_0 = arith.constant 0 : i32
    %c0_i32_1 = arith.constant 0 : i32
    return %arg0, %c0_i32, %c0_i32_0 : i32, i32, i32
  }
  func.func @transform_4(%arg0: i32, %arg1: i32) -> (i32, i32) {
    %c0_i32 = arith.constant 0 : i32
    %c0_i32_0 = arith.constant 0 : i32
    %c0_i32_1 = arith.constant 0 : i32
    return %c0_i32, %c0_i32_0 : i32, i32
  }
  func.func @transform_5(%arg0: i32, %arg1: i32) -> (i32, i32) {
    %c0_i32 = arith.constant 0 : i32
    %c0_i32_0 = arith.constant 0 : i32
    %c0_i32_1 = arith.constant 0 : i32
    return %c0_i32, %c0_i32_0 : i32, i32
  }
  func.func @transform_6(%arg0: i32, %arg1: i32) -> (i32, i32) {
    %c0_i32 = arith.constant 0 : i32
    %c0_i32_0 = arith.constant 0 : i32
    %c0_i32_1 = arith.constant 0 : i32
    return %c0_i32, %c0_i32_0 : i32, i32
  }
  func.func @transform_7(%arg0: i32, %arg1: i32) -> (i32, i32, i32) {
    %c0_i32 = arith.constant 0 : i32
    %c0_i32_0 = arith.constant 0 : i32
    return %arg0, %arg1, %c0_i32 : i32, i32, i32
  }
}

module attributes {stable_mosaic.version = 11 : i64} {
  func.func @mlp_kernel(%arg0: i32, %arg1: i32, %arg2: memref<1x8x32xf32, #tpu.memory_space<vmem>>, %arg3: memref<1x32xf32, #tpu.memory_space<vmem>>, %arg4: memref<1x32xf32, #tpu.memory_space<vmem>>, %arg5: memref<32x128xbf16, #tpu.memory_space<vmem>>, %arg6: memref<1x128xf32, #tpu.memory_space<vmem>>, %arg7: memref<128x32xbf16, #tpu.memory_space<vmem>>, %arg8: memref<1x32xf32, #tpu.memory_space<vmem>>, %arg9: memref<1x32xf32, #tpu.memory_space<vmem>>, %arg10: memref<1x8x32xf32, #tpu.memory_space<vmem>>) attributes {dimension_semantics = [#tpu.dimension_semantics<parallel>, #tpu.dimension_semantics<parallel>], iteration_bounds = array<i64: 2, 1>, scalar_prefetch = 0 : i64, scratch_operands = 0 : i64, tpu.core_type = #tpu.core_type<tc>, window_params = [{transform_indices = @transform_0, window_bounds = array<i64: 1, 8, 32>}, {pipeline_mode = #tpu.pipeline_mode<synchronous>, transform_indices = @transform_1, window_bounds = array<i64: 1, 32>}, {pipeline_mode = #tpu.pipeline_mode<synchronous>, transform_indices = @transform_2, window_bounds = array<i64: 1, 32>}, {pipeline_mode = #tpu.pipeline_mode<synchronous>, transform_indices = @transform_3, window_bounds = array<i64: 32, 128>}, {pipeline_mode = #tpu.pipeline_mode<synchronous>, transform_indices = @transform_4, window_bounds = array<i64: 1, 128>}, {pipeline_mode = #tpu.pipeline_mode<synchronous>, transform_indices = @transform_5, window_bounds = array<i64: 128, 32>}, {pipeline_mode = #tpu.pipeline_mode<synchronous>, transform_indices = @transform_6, window_bounds = array<i64: 1, 32>}, {pipeline_mode = #tpu.pipeline_mode<synchronous>, transform_indices = @transform_7, window_bounds = array<i64: 1, 32>}, {transform_indices = @transform_8, window_bounds = array<i64: 1, 8, 32>}]} {
    %c0 = arith.constant 0 : index
    %c0_0 = arith.constant 0 : index
    %c0_1 = arith.constant 0 : index
    %0 = vector.load %arg2[%c0, %c0_0, %c0_1] : memref<1x8x32xf32, #tpu.memory_space<vmem>>, vector<1x8x32xf32>
    %1 = vector.shape_cast %0 : vector<1x8x32xf32> to vector<8x32xf32>
    %c0_2 = arith.constant 0 : index
    %c0_3 = arith.constant 0 : index
    %2 = vector.load %arg3[%c0_2, %c0_3] : memref<1x32xf32, #tpu.memory_space<vmem>>, vector<1x32xf32>
    %c0_4 = arith.constant 0 : index
    %c0_5 = arith.constant 0 : index
    %3 = vector.load %arg4[%c0_4, %c0_5] : memref<1x32xf32, #tpu.memory_space<vmem>>, vector<1x32xf32>
    %cst = arith.constant dense<0.000000e+00> : vector<8xf32>
    %4 = vector.multi_reduction <add>, %1, %cst [1] : vector<8x32xf32> to vector<8xf32>
    %5 = vector.shape_cast %4 : vector<8xf32> to vector<8x1xf32>
    %cst_6 = arith.constant 3.200000e+01 : f32
    %6 = vector.broadcast %cst_6 : f32 to vector<8x1xf32>
    %7 = arith.divf %5, %6 : vector<8x1xf32>
    %8 = vector.broadcast %7 : vector<8x1xf32> to vector<8x32xf32>
    %9 = arith.subf %1, %8 : vector<8x32xf32>
    %10 = arith.mulf %9, %9 : vector<8x32xf32>
    %cst_7 = arith.constant dense<0.000000e+00> : vector<8xf32>
    %11 = vector.multi_reduction <add>, %10, %cst_7 [1] : vector<8x32xf32> to vector<8xf32>
    %12 = vector.shape_cast %11 : vector<8xf32> to vector<8x1xf32>
    %cst_8 = arith.constant 3.200000e+01 : f32
    %13 = vector.broadcast %cst_8 : f32 to vector<8x1xf32>
    %14 = arith.divf %12, %13 : vector<8x1xf32>
    %cst_9 = arith.constant 9.99999974E-6 : f32
    %15 = vector.broadcast %cst_9 : f32 to vector<8x1xf32>
    %16 = arith.addf %14, %15 : vector<8x1xf32>
    %17 = math.rsqrt %16 : vector<8x1xf32>
    %18 = vector.broadcast %17 : vector<8x1xf32> to vector<8x32xf32>
    %19 = arith.mulf %9, %18 : vector<8x32xf32>
    %20 = vector.broadcast %2 : vector<1x32xf32> to vector<8x32xf32>
    %21 = arith.mulf %19, %20 : vector<8x32xf32>
    %22 = vector.broadcast %3 : vector<1x32xf32> to vector<8x32xf32>
    %23 = arith.addf %21, %22 : vector<8x32xf32>
    %24 = arith.truncf %23 : vector<8x32xf32> to vector<8x32xbf16>
    %cst_10 = arith.constant 0.000000e+00 : f32
    %25 = vector.broadcast %cst_10 : f32 to vector<8x32xf32>
    %c0_11 = arith.constant 0 : index
    %c0_12 = arith.constant 0 : index
    %26 = vector.load %arg5[%c0_11, %c0_12] : memref<32x128xbf16, #tpu.memory_space<vmem>>, vector<32x128xbf16>
    %cst_13 = arith.constant dense<0.000000e+00> : vector<8x128xf32>
    %27 = tpu.matmul %24, %26, %cst_13 {dimension_numbers = #tpu.dot_dimension_numbers<[1], [0], [0], [1], [0, 0, 1, 1], [], []>} : vector<8x32xbf16>, vector<32x128xbf16>, vector<8x128xf32> -> vector<8x128xf32>
    %c0_14 = arith.constant 0 : index
    %c0_15 = arith.constant 0 : index
    %28 = vector.load %arg6[%c0_14, %c0_15] : memref<1x128xf32, #tpu.memory_space<vmem>>, vector<1x128xf32>
    %29 = vector.broadcast %28 : vector<1x128xf32> to vector<8x128xf32>
    %30 = arith.addf %27, %29 : vector<8x128xf32>
    %cst_16 = arith.constant 5.000000e-01 : f32
    %31 = vector.broadcast %cst_16 : f32 to vector<8x128xf32>
    %32 = arith.mulf %31, %30 : vector<8x128xf32>
    %cst_17 = arith.constant 0.707106769 : f32
    %33 = vector.broadcast %cst_17 : f32 to vector<8x128xf32>
    %34 = arith.mulf %30, %33 : vector<8x128xf32>
    %35 = math.erf %34 : vector<8x128xf32>
    %cst_18 = arith.constant 1.000000e+00 : f32
    %36 = vector.broadcast %cst_18 : f32 to vector<8x128xf32>
    %37 = arith.addf %36, %35 : vector<8x128xf32>
    %38 = arith.mulf %32, %37 : vector<8x128xf32>
    %39 = arith.truncf %38 : vector<8x128xf32> to vector<8x128xbf16>
    %c0_19 = arith.constant 0 : index
    %c0_20 = arith.constant 0 : index
    %40 = vector.load %arg7[%c0_19, %c0_20] : memref<128x32xbf16, #tpu.memory_space<vmem>>, vector<128x32xbf16>
    %cst_21 = arith.constant dense<0.000000e+00> : vector<8x32xf32>
    %41 = tpu.matmul %39, %40, %cst_21 {dimension_numbers = #tpu.dot_dimension_numbers<[1], [0], [0], [1], [0, 0, 1, 1], [], []>} : vector<8x128xbf16>, vector<128x32xbf16>, vector<8x32xf32> -> vector<8x32xf32>
    %42 = arith.addf %25, %41 : vector<8x32xf32>
    %c0_22 = arith.constant 0 : index
    %c0_23 = arith.constant 0 : index
    %43 = vector.load %arg8[%c0_22, %c0_23] : memref<1x32xf32, #tpu.memory_space<vmem>>, vector<1x32xf32>
    %44 = vector.broadcast %43 : vector<1x32xf32> to vector<8x32xf32>
    %45 = arith.addf %42, %44 : vector<8x32xf32>
    %c0_24 = arith.constant 0 : index
    %c0_25 = arith.constant 0 : index
    %46 = vector.load %arg9[%c0_24, %c0_25] : memref<1x32xf32, #tpu.memory_space<vmem>>, vector<1x32xf32>
    %47 = vector.broadcast %46 : vector<1x32xf32> to vector<8x32xf32>
    %48 = arith.mulf %47, %45 : vector<8x32xf32>
    %49 = arith.addf %1, %48 : vector<8x32xf32>
    %c0_26 = arith.constant 0 : index
    %c0_27 = arith.constant 0 : index
    %c0_28 = arith.constant 0 : index
    %50 = vector.load %arg10[%c0_26, %c0_27, %c0_28] : memref<1x8x32xf32, #tpu.memory_space<vmem>>, vector<1x8x32xf32>
    %51 = vector.shape_cast %50 : vector<1x8x32xf32> to vector<8x32xf32>
    %52 = vector.shape_cast %49 : vector<8x32xf32> to vector<1x8x32xf32>
    tpu.vector_store %arg10[%c0_26, %c0_27, %c0_28], %52 {strides = array<i32>} : memref<1x8x32xf32, #tpu.memory_space<vmem>>, vector<1x8x32xf32>,
    return
  }
  func.func @transform_0(%arg0: i32, %arg1: i32) -> (i32, i32, i32) {
    %c0_i32 = arith.constant 0 : i32
    %c0_i32_0 = arith.constant 0 : i32
    return %arg0, %arg1, %c0_i32 : i32, i32, i32
  }
  func.func @transform_1(%arg0: i32, %arg1: i32) -> (i32, i32) {
    %c0_i32 = arith.constant 0 : i32
    %c0_i32_0 = arith.constant 0 : i32
    %c0_i32_1 = arith.constant 0 : i32
    return %c0_i32, %c0_i32_0 : i32, i32
  }
  func.func @transform_2(%arg0: i32, %arg1: i32) -> (i32, i32) {
    %c0_i32 = arith.constant 0 : i32
    %c0_i32_0 = arith.constant 0 : i32
    %c0_i32_1 = arith.constant 0 : i32
    return %c0_i32, %c0_i32_0 : i32, i32
  }
  func.func @transform_3(%arg0: i32, %arg1: i32) -> (i32, i32) {
    %c0_i32 = arith.constant 0 : i32
    %c0_i32_0 = arith.constant 0 : i32
    %c0_i32_1 = arith.constant 0 : i32
    return %c0_i32, %c0_i32_0 : i32, i32
  }
  func.func @transform_4(%arg0: i32, %arg1: i32) -> (i32, i32) {
    %c0_i32 = arith.constant 0 : i32
    %c0_i32_0 = arith.constant 0 : i32
    %c0_i32_1 = arith.constant 0 : i32
    return %c0_i32, %c0_i32_0 : i32, i32
  }
  func.func @transform_5(%arg0: i32, %arg1: i32) -> (i32, i32) {
    %c0_i32 = arith.constant 0 : i32
    %c0_i32_0 = arith.constant 0 : i32
    %c0_i32_1 = arith.constant 0 : i32
    return %c0_i32, %c0_i32_0 : i32, i32
  }
  func.func @transform_6(%arg0: i32, %arg1: i32) -> (i32, i32) {
    %c0_i32 = arith.constant 0 : i32
    %c0_i32_0 = arith.constant 0 : i32
    %c0_i32_1 = arith.constant 0 : i32
    return %c0_i32, %c0_i32_0 : i32, i32
  }
  func.func @transform_7(%arg0: i32, %arg1: i32) -> (i32, i32) {
    %c0_i32 = arith.constant 0 : i32
    %c0_i32_0 = arith.constant 0 : i32
    %c0_i32_1 = arith.constant 0 : i32
    return %c0_i32, %c0_i32_0 : i32, i32
  }
  func.func @transform_8(%arg0: i32, %arg1: i32) -> (i32, i32, i32) {
    %c0_i32 = arith.constant 0 : i32
    %c0_i32_0 = arith.constant 0 : i32
    return %arg0, %arg1, %c0_i32 : i32, i32, i32
  }
}

</mosaic_0001>

<bundles_post_ra>
// kernel: block_forward.4
= control target key start
LH: loop header
LB: loop body
LE: loop exit
PB: predicated region body
PF: predicated region fallthrough
CT: control target
= control target key end

     0   :  { %12 = vsyncpa [#allocation3], 0  ;;  %s1217_s0 = inlined_call_operand.vmem [shape: f32[2,8,32], index: 0, kind: input, shape index: {}]   ;;  %s1218_s1 = inlined_call_operand.vmem [shape: bf16[2,8,32], index: 1, kind: input, shape index: {}]   ;;  %s1219_s2 = inlined_call_operand.vmem [shape: bf16[2,8,32], index: 2, kind: input, shape index: {}]   ;;  %s1220_s3 = inlined_call_operand.vmem [shape: bf16[2,8,32], index: 3, kind: input, shape index: {}]   ;;  %s1221_s4 = inlined_call_operand.hbm [shape: bf16[32,32], index: 4, kind: input, shape index: {}]   ;;  %s1222_s5 = inlined_call_operand.vmem [shape: f32[1,32], index: 5, kind: input, shape index: {}]   ;;  %s1223_s6 = inlined_call_operand.hbm [shape: f32[1,32], index: 6, kind: input, shape index: {}]   ;;  %s1224_s7 = inlined_call_operand.vmem [shape: f32[2,8,32], index: 7, kind: output, shape index: {}]  }
   0x1   :  { %13 = vsyncpa [#allocation5], 0  ;;  %s1103_s24 = smov 0   ;;  %s1105_s25 = smov 0  }
   0x2   :  { %s1107_s26 = smov 0  }
   0x3 LB: > { %s868_s27 = sadd.s32 4294967295, %s1054_s26   ;;  %s31_s28 = sadd.s32 1, %s1050_s25  ;;  %s1054_s26 = sphi %s1107_s26, %s19_s26   ;;  %s1050_s25 = sphi %s1105_s25, %s1228_s25   ;;  %s1046_s24 = sphi %s1103_s24, %s1227_s24  }
   0x4   : > { %p33_p0 = scmp.ge.s32.totalorder %s31_s28, 2  ;;  %p870_p1 = scmp.ge.s32.totalorder %s1054_s26, 1 }
   0x5   : > { %p235_p2 = scmp.lt.s32.totalorder %s1054_s26, 3  ;;  %p1128_p4 = scmp.eq.s32.totalorder %s868_s27, 0 }
   0x6   : > { %s1230_s28 = smov (%p33_p0, %s31_s28), 0  ;;  %s246_s10 = sshll.u32 %s1221_s4, 4  ;;  %s247_s10 = int_to_ptr.hbm [resolvable:$true] %s246_s10 }
   0x7   : > { %p1124_p3 = pnand %p870_p1, %p235_p2  ;;  %s1056_s11 = smov [#allocation2]  }
   0x8   : > { %s248_s12 = sshll.u32 %s1056_s11, 4  ;;  %s264_s15 = sshll.u32 %s1223_s6, 4  ;;  %s249_s12 = int_to_ptr.vmem [resolvable:$true] %s248_s12  ;;  %s265_s15 = int_to_ptr.hbm [resolvable:$true] %s264_s15 }
   0x9   : > { %p904_p5 = pneg %p1124_p3  ;;  %s1057_s16 = smov 64  }
   0xa   : > { %s1058_s17 = smov 4   ;;  %s1059_s18 = smov [#allocation4]  }
   0xb   : > { %p905_p6 = pnand %p1128_p4, %p904_p5  ;;  %s266_s19 = sshll.u32 %s1059_s18, 4  ;;  %s267_s19 = int_to_ptr.vmem [resolvable:$true] %s266_s19 }
   0xc   : > { %313 = sbr.rel (%p1124_p3) target bundleno = 980 (0x3d4), region = 48 }
   0xd   : > { %907 = dma.hbm_to_vmem [thread:$0]  (!%p905_p6), %s247_s10, 256, %s249_s12, [#allocation3], %s1057_s16, %s1057_s16, %s1058_s17  }
   0xe   : > { %910 = dma.hbm_to_vmem [thread:$0]  (!%p905_p6), %s265_s15, 16, %s267_s19, [#allocation5]  }
  0x11   : > { %1037 = dma.done.wait (%p1128_p4), [#allocation3], 256  }
  0x12   : > { %1039 = vsyncadd (%p1128_p4), [#allocation3], 4294967040 }
  0x13   : > { %1041 = dma.done.wait (%p1128_p4), [#allocation5], 16  }
  0x14   : > { %1043 = vsyncadd (%p1128_p4), [#allocation5], 4294967280  ;;  %p370_p7 = scmp.lt.s32.totalorder %s1046_s24, 1  ;;  %vm403_vm0 = vcmask 64512   ;;  %s1060_s30 = smov 120   ;;  %vm436_vm1 = vcmask 1043456  }
  0x15   : > { %s1061_s12 = smov 104   ;;  %s1062_s13 = smov 112   ;;  %v456_v28 = vld [vmem:[#allocation2] sm:$0xf]  ;;  %v523_v51 = vld [vmem:[#allocation2 + $0x4] sm:$0xf] }
  0x16   : > { %s1232_s24 = smov (!%p370_p7, %s1046_s24), 1  ;;  %v547_v29 = vsel %vm436_vm1, %v456_v28, 0  ;;  %v528_v52 = vsel %vm436_vm1, %v523_v51, 0  ;;  %vm730_vm2 = vcmask 261120  }
  0x17   : > { %s878_s20 = sshll.u32 %s1232_s24, 2  ;;  %s877_s14 = sshll.u32 %s1232_s24, 3 }
  0x18   : > { %s387_s23 = scalar_lea.vmem %s1219_s2, %s878_s20  ;;  %s383_s8 = scalar_lea.vmem %s1218_s1, %s878_s20 }
  0x19   : > { %v401_v0 = vld [vmem:[%s387_s23] sm:$0xf]  ;;  %s391_s11 = scalar_lea.vmem %s1220_s3, %s878_s20  ;;  %s376_s19 = scalar_lea.vmem %s1217_s0, %s877_s14 }
  0x1a   : > { %v408_v1 = vsel %vm403_vm0, %v401_v0, 0  ;;  %v463_v2 = vunpack.c.l.b16 %v401_v0  ;;  %v400_v3 = vld [vmem:[%s383_s8] sm:$0xf]  ;;  %s398_s22 = scalar_lea.vmem %s1224_s7, %s877_s14 }
  0x1b   : > { %417 = vmatpush.bf16.xpose.msra.mxu0 %v408_v1  ;;  %v458_v5 = vunpack.c.l.b16 %v400_v3  ;;  %v402_v7 = vld [vmem:[%s391_s11] sm:$0xf] }
  0x1c   : > { %v464_v4 = vpack.c.b16 %v463_v2, %v463_v2  ;;  %v497_v8 = vunpack.c.l.b16 %v402_v7  ;;  %v438_v16 = vsel %vm436_vm1, %v402_v7, 0 }
  0x1d   : > { %v459_v6 = vpack.c.b16 %v458_v5, %v458_v5  ;;  %447 = vmatpush.bf16.msra.mxu1 %v438_v16 }
  0x1e   : > { %465 = vrot.lane.b32.xlu0 %v464_v4, %s1060_s30  ;;  %v498_v9 = vpack.c.b16 %v497_v8, %v497_v8 }
  0x20   : > { %499 = vrot.lane.b32.xlu2 %v498_v9, %s1060_s30 }
  0x21   : > { %537 = vmatpush.bf16.msrb.mxu1 %v528_v52 }
  0x22   : > { %882 = vmatmul.msk.bf16.vlgmr.msra.gmra.mxu0 %vm403_vm0, %v400_v3 }
  0x26   : > { %460 = vrot.lane.b32.xlu0 %v459_v6, %s1060_s30 }
  0x2e   : > { %642 = vrot.lane.b32.xlu0 %v464_v4, %s1061_s12 }
  0x36   : > { %640 = vrot.lane.b32.xlu0 %v459_v6, %s1061_s12 }
  0x3e   : > { %562 = vrot.lane.b32.xlu0 %v459_v6, %s1062_s13 }
  0x7a   : > { %v500_v20 = vpop.permute.xlu2 %499 }
  0x7b   : > { %v505_v21 = vsel %vm436_vm1, %v500_v20, 0  ;;  %v697_v20 = vld [vmem:[#allocation2 + $0xc] sm:$0xf] }
  0x7c   : > { %514 = vmatpush.bf16.msra.mxu3 %v505_v21  ;;  %v702_v21 = vsel %vm436_vm1, %v697_v20, 0 }
  0x80   : > { %556 = vmatpush.bf16.msrb.mxu3 %v547_v29 }
  0x90   : > { %v466_v10 = vpop.permute.xlu0 %465 }
  0x91   : > { %v471_v11 = vsel %vm403_vm0, %v466_v10, 0 }
  0x92   : > { %480 = vmatpush.bf16.xpose.msra.mxu2 %v471_v11 }
  0x98   : > { %v461_v12 = vpop.permute.xlu0 %460 }
  0x99   : > { %884 = vmatmul.msk.bf16.vlgmr.msra.gmra.mxu2 %vm403_vm0, %v461_v12 }
  0x9f   : > { %v419_v13 = vpop.f32.mrf.mxu0 }
  0xa0   : > { %v423_v14 = vsel %vm403_vm0, %v419_v13, -inf  ;;  %v643_v34 = vpop.permute.xlu0 %642 }
  0xa1   : > { %424 = vmax.xlane.f32.xlu1 %v423_v14  ;;  %v648_v38 = vsel %vm403_vm0, %v643_v34, 0 }
  0xa7   : > { %v421_v15 = vpop.f32.mrf.mxu0 }
  0xa8   : > { %v641_v41 = vpop.permute.xlu0 %640 }
  0xb0   : > { %v563_v50 = vpop.permute.xlu0 %562 }
 0x114   : > { %v425_v17 = vpop.xlane.xlu1 %424 }
 0x115   : > { %v426_v18 = vsub.f32 %v419_v13, %v425_v17 }
 0x117   : > { %v427_v19 = vmul.f32 1.442695, %v426_v18  ;;  %v619_v18 = vld [vmem:[#allocation2 + $0x8] sm:$0xf] }
 0x119   : > { %948 = vpow2.f32 %v427_v19  ;;  %v624_v19 = vsel %vm436_vm1, %v619_v18, 0 }
 0x11c   : > { %v482_v22 = vpop.f32.mrf.mxu2 }
 0x11d   : > { %v486_v23 = vsel %vm403_vm0, %v482_v22, -inf }
 0x11e   : > { %487 = vmax.xlane.f32.xlu1 %v486_v23 }
 0x11f   : > { %v949_v24 = vpop.eup %948 }
 0x120   : > { %v429_v25 = vsel %vm403_vm0, %v949_v24, 0.0  ;;  %v432_v26 = vpack.c.bf16 %v949_v24, %v949_v24 }
 0x121   : > { %430 = vadd.xlane.f32.xlu2 %v429_v25 }
 0x122   : > { %883 = vmatmul.msk.bf16.vlgmr.msra.gmra.mxu1 %vm403_vm0, %v432_v26 }
 0x123   : > { %633 = vmatpush.bf16.msra.mxu1 %v624_v19 }
 0x124   : > { %v484_v27 = vpop.f32.mrf.mxu2 }
 0x137   : > { %564 = vrot.lane.b32.xlu1 %v464_v4, %s1062_s13 }
 0x139   : > { %595 = vrot.lane.b32.xlu2 %v498_v9, %s1062_s13 }
 0x141   : > { %673 = vrot.lane.b32.xlu2 %v498_v9, %s1061_s12 }
 0x191   : > { %v488_v30 = vpop.xlane.xlu1 %487 }
 0x192   : > { %v489_v31 = vsub.f32 %v482_v22, %v488_v30 }
 0x194   : > { %v490_v32 = vmul.f32 1.442695, %v489_v31  ;;  %v431_v33 = vpop.xlane.xlu2 %430 }
 0x196   : > { %950 = vpow2.f32 %v490_v32 }
 0x197   : > { %952 = vrcp.f32 %v431_v33 }
 0x19c   : > { %v951_v35 = vpop.eup %950  ;;  %v596_v40 = vpop.permute.xlu2 %595 }
 0x19d   : > { %v492_v36 = vsel %vm403_vm0, %v951_v35, 0.0  ;;  %v495_v37 = vpack.c.bf16 %v951_v35, %v951_v35  ;;  %v953_v43 = vpop.eup %952  ;;  %v601_v3 = vsel %vm436_vm1, %v596_v40, 0 }
 0x19e   : > { %493 = vadd.xlane.f32.xlu2 %v492_v36  ;;  %610 = vmatpush.bf16.msrb.mxu2 %v601_v3 }
 0x19f   : > { %v449_v39 = vpop.f32.mrf.mxu1  ;;  %885 = vmatmul.msk.bf16.vlgmr.msra.gmra.mxu3 %vm403_vm0, %v495_v37 }
 0x1a0   : > { %657 = vmatpush.bf16.xpose.msra.mxu3 %v648_v38  ;;  %v454_v45 = vmul.f32 %v953_v43, %v449_v39  ;;  %v946_v38 = vld [vmem:[%s1222_s5] ss:$0 sm:$0xff] }
 0x1a1   : > { %v723_v43 = vld [vmem:[%s376_s19] sm:$0xff] }
 0x1a2   : > { %v455_v49 = vpack.c.bf16 %v454_v45, %v454_v45  ;;  %711 = vmatpush.bf16.msra.mxu2 %v702_v21 }
 0x1a4   : > { %v674_v44 = vpop.permute.xlu2 %673 }
 0x1a5   : > { %v679_v47 = vsel %vm436_vm1, %v674_v44, 0 }
 0x1a7   : > { %v451_v42 = vpop.f32.mrf.mxu1 }
 0x1a9   : > { %v565_v46 = vpop.permute.xlu1 %564 }
 0x1aa   : > { %v570_v48 = vsel %vm403_vm0, %v565_v46, 0 }
 0x1ab   : > { %579 = vmatpush.bf16.xpose.msrb.mxu0 %v570_v48 }
 0x1af   : > { %887 = vmatmul.msk.bf16.vlgmr.msrb.gmra.mxu3 %vm403_vm0, %v455_v49 }
 0x1b2   : > { %888 = vmatmul.msk.bf16.vlgmr.msrb.gmra.mxu0 %vm403_vm0, %v563_v50 }
 0x1b3   : > { %688 = vmatpush.bf16.msra.mxu0 %v679_v47 }
 0x1bf   : > { %891 = vmatmul.msk.bf16.vlgmr.msra.gmra.mxu3 %vm403_vm0, %v641_v41  ;;  %v947_v41 = vld [vmem:[#allocation4] ss:$0 sm:$0xff] }
 0x211   : > { %v494_v53 = vpop.xlane.xlu2 %493 }
 0x212   : > { %954 = vrcp.f32 %v494_v53 }
 0x218   : > { %v955_v54 = vpop.eup %954 }
 0x222   : > { %v516_v55 = vpop.f32.mrf.mxu3 }
 0x223   : > { %v521_v56 = vmul.f32 %v955_v54, %v516_v55 }
 0x225   : > { %v522_v57 = vpack.c.bf16 %v521_v56, %v521_v56 }
 0x227   : > { %886 = vmatmul.msk.bf16.vlgmr.msrb.gmra.mxu1 %vm403_vm0, %v522_v57 }
 0x22a   : > { %v518_v58 = vpop.f32.mrf.mxu3 }
 0x22f   : > { %v581_v59 = vpop.f32.mrf.mxu0 }
 0x230   : > { %v585_v60 = vsel %vm403_vm0, %v581_v59, -inf }
 0x231   : > { %586 = vmax.xlane.f32.xlu0 %v585_v60 }
 0x232   : > { %v558_v61 = vpop.f32.mrf.mxu3 }
 0x237   : > { %v583_v62 = vpop.f32.mrf.mxu0 }
 0x23a   : > { %v560_v63 = vpop.f32.mrf.mxu3 }
 0x242   : > { %v659_v0 = vpop.f32.mrf.mxu3 }
 0x243   : > { %v663_v1 = vsel %vm403_vm0, %v659_v0, -inf }
 0x244   : > { %664 = vmax.xlane.f32.xlu1 %v663_v1 }
 0x24a   : > { %v661_v2 = vpop.f32.mrf.mxu3 }
 0x2a4   : > { %v539_v4 = vpop.f32.mrf.mxu1  ;;  %v587_v5 = vpop.xlane.xlu0 %586 }
 0x2a5   : > { %v588_v6 = vsub.f32 %v581_v59, %v587_v5  ;;  %v559_v36 = vadd.f32 %v558_v61, %v539_v4 }
 0x2a7   : > { %v589_v7 = vmul.f32 1.442695, %v588_v6 }
 0x2a9   : > { %956 = vpow2.f32 %v589_v7 }
 0x2ac   : > { %v541_v8 = vpop.f32.mrf.mxu1 }
 0x2af   : > { %v957_v9 = vpop.eup %956 }
 0x2b0   : > { %v591_v10 = vsel %vm403_vm0, %v957_v9, 0.0  ;;  %v594_v11 = vpack.c.bf16 %v957_v9, %v957_v9 }
 0x2b1   : > { %592 = vadd.xlane.f32.xlu1 %v591_v10 }
 0x2b2   : > { %889 = vmatmul.msk.bf16.vlgmr.msrb.gmra.mxu2 %vm403_vm0, %v594_v11 }
 0x2b7   : > { %v665_v12 = vpop.xlane.xlu1 %664 }
 0x2b8   : > { %v666_v13 = vsub.f32 %v659_v0, %v665_v12 }
 0x2ba   : > { %v667_v14 = vmul.f32 1.442695, %v666_v13 }
 0x2bc   : > { %958 = vpow2.f32 %v667_v14 }
 0x2c2   : > { %v959_v15 = vpop.eup %958 }
 0x2c3   : > { %v672_v16 = vpack.c.bf16 %v959_v15, %v959_v15  ;;  %v669_v17 = vsel %vm403_vm0, %v959_v15, 0.0 }
 0x2c4   : > { %670 = vadd.xlane.f32.xlu0 %v669_v17 }
 0x2c5   : > { %892 = vmatmul.msk.bf16.vlgmr.msra.gmra.mxu0 %vm403_vm0, %v672_v16 }
 0x324   : > { %v593_v22 = vpop.xlane.xlu1 %592 }
 0x325   : > { %960 = vrcp.f32 %v593_v22 }
 0x32b   : > { %v961_v23 = vpop.eup %960 }
 0x335   : > { %v612_v24 = vpop.f32.mrf.mxu2 }
 0x336   : > { %v617_v25 = vmul.f32 %v961_v23, %v612_v24 }
 0x337   : > { %v671_v27 = vpop.xlane.xlu0 %670 }
 0x338   : > { %v618_v26 = vpack.c.bf16 %v617_v25, %v617_v25  ;;  %962 = vrcp.f32 %v671_v27 }
 0x33a   : > { %890 = vmatmul.msk.bf16.vlgmr.msra.gmra.mxu1 %vm403_vm0, %v618_v26 }
 0x33d   : > { %v614_v28 = vpop.f32.mrf.mxu2 }
 0x33e   : > { %v963_v29 = vpop.eup %962 }
 0x342   : > { %v690_v30 = vpop.f32.mrf.mxu0 }
 0x343   : > { %v695_v31 = vmul.f32 %v963_v29, %v690_v30 }
 0x345   : > { %v696_v32 = vpack.c.bf16 %v695_v31, %v695_v31 }
 0x347   : > { %893 = vmatmul.msk.bf16.vlgmr.msra.gmra.mxu2 %vm403_vm0, %v696_v32 }
 0x34a   : > { %v692_v33 = vpop.f32.mrf.mxu0 }
 0x3b7   : > { %v635_v34 = vpop.f32.mrf.mxu1 }
 0x3b8   : > { %v639_v37 = vadd.f32 %v635_v34, %v559_v36 }
 0x3bf   : > { %v637_v35 = vpop.f32.mrf.mxu1 }
 0x3ca   : > { %v713_v39 = vpop.f32.mrf.mxu2 }
 0x3cb   : > { %v717_v40 = vadd.f32 %v713_v39, %v639_v37 }
 0x3cd   : > { %v722_v42 = vadd.f32 %v946_v38, %v717_v40 }
 0x3cf   : > { %v728_v44 = vmul.f32 %v947_v41, %v722_v42 }
 0x3d1   : > { %v729_v45 = vadd.f32 %v728_v44, %v723_v43 }
 0x3d2   : > { %v715_v46 = vpop.f32.mrf.mxu2 }
 0x3d3   : > { %731 = vst.msk [vmem:[%s398_s22] sm:$0xff] %vm730_vm2, %v729_v45 }
 0x3d4 PF: > { %s19_s26 = sadd.s32 1, %s1054_s26   ;;  %s1227_s24 = smov %s1050_s25 }
 0x3d5   : > { %p16_p8 = scmp.ge.s32.totalorder %s19_s26, 4   ;;  %s1228_s25 = smov %s1230_s28 }
 0x3d7   :  { %18 = sbr.rel (!%p16_p8) target bundleno = 3 (0x3), region = 96 }
 0x3dc   :  { %757 = vsyncpa [#allocation3], 1 }
 0x3dd   :  { %759 = vsyncpa [#allocation3 + $0x1], 1 }
 0x3de   :  { %760 = vsyncpa [#allocation5], 1 }

// kernel: block_forward.3
= control target key start
LH: loop header
LB: loop body
LE: loop exit
PB: predicated region body
PF: predicated region fallthrough
CT: control target
= control target key end

     0   :  { %s1258_s0 = inlined_call_operand.hbm [shape: f32[2,8,32], index: 0, kind: input, shape index: {}]   ;;  %s1259_s1 = inlined_call_operand.hbm [shape: f32[1,32], index: 1, kind: input, shape index: {}]   ;;  %s1260_s2 = inlined_call_operand.hbm [shape: f32[1,32], index: 2, kind: input, shape index: {}]   ;;  %s1261_s3 = inlined_call_operand.hbm [shape: bf16[32,96], index: 3, kind: input, shape index: {}]   ;;  %s1262_s4 = inlined_call_operand.hbm [shape: f32[1,96], index: 4, kind: input, shape index: {}]   ;;  %s1263_s5 = inlined_call_operand.vmem [shape: bf16[2,8,32], index: 5, kind: output, shape index: {0}]   ;;  %s1264_s6 = inlined_call_operand.vmem [shape: bf16[2,8,32], index: 6, kind: output, shape index: {1}]   ;;  %s1265_s7 = inlined_call_operand.vmem [shape: bf16[2,8,32], index: 7, kind: output, shape index: {2}]  }
   0x1   :  { %1266 = sst [smem:[#allocation13_spill]] %s1259_s1 }
   0x2   :  { %1267 = sst [smem:[#allocation14_spill]] %s1260_s2 }
   0x3   :  { %13 = vsyncpa [#allocation3], 0 }
   0x4   :  { %15 = vsyncpa [#allocation3 + $0x1], 0 }
   0x5   :  { %16 = vsyncpa [#allocation5], 0 }
   0x6   :  { %17 = vsyncpa [#allocation8], 0  ;;  %s1110_s24 = smov 0   ;;  %s1112_s25 = smov 0  }
   0x7   :  { %s1114_s26 = smov 0   ;;  %s1116_s27 = smov 0  }
   0x8   :  { %s1118_s28 = smov 0   ;;  %s1120_s29 = smov 0  }
   0x9 LB: > { %s711_s30 = sadd.s32 4294967295, %s1059_s29   ;;  %p713_p0 = scmp.ge.s32.totalorder %s1059_s29, 1  ;;  %s1059_s29 = sphi %s1120_s29, %s23_s29   ;;  %s1055_s28 = sphi %s1118_s28, %s1279_s28   ;;  %s1051_s27 = sphi %s1116_s27, %s1278_s27   ;;  %s1047_s26 = sphi %s1114_s26, %s1277_s26   ;;  %s1043_s25 = sphi %s1112_s25, %s1276_s25   ;;  %s1039_s24 = sphi %s1110_s24, %s1275_s24  }
   0xa   : > { %p1142_p1 = scmp.eq.s32.totalorder %s711_s30, 0  ;;  %p236_p2 = scmp.lt.s32.totalorder %s1059_s29, 3 }
   0xb   : > { %s1269_s1 = sld [smem:[#allocation13_spill]]  ;;  %s1061_s13 = smov [#allocation4]  }
   0xc   : > { %p1150_p3 = pnand %p713_p0, %p236_p2  ;;  %s250_s14 = sshll.u32 %s1061_s13, 4  ;;  %s251_s14 = int_to_ptr.vmem [resolvable:$true] %s250_s14 }
   0xd   : > { %s271_s17 = sshll.u32 %s1261_s3, 4  ;;  %s1062_s19 = smov [#allocation7]   ;;  %s272_s17 = int_to_ptr.hbm [resolvable:$true] %s271_s17 }
   0xe   : > { %p761_p4 = pneg %p1150_p3  ;;  %s273_s20 = sshll.u32 %s1062_s19, 4  ;;  %s274_s20 = int_to_ptr.vmem [resolvable:$true] %s273_s20 }
   0xf   : > { %s1063_s21 = smov 64   ;;  %s1064_s22 = smov 4  }
  0x10   : > { %p1161_p5 = pnand %p761_p4, %p1142_p1  ;;  %s1272_s2 = sld [smem:[#allocation14_spill]] }
  0x11   : > { %s248_s11 = sshll.u32 %s1269_s1, 4  ;;  %s1065_s10 = smov [#allocation6]   ;;  %s249_s11 = int_to_ptr.hbm [resolvable:$true] %s248_s11 }
  0x12   : > { %764 = dma.hbm_to_vmem [thread:$0]  (!%p1161_p5), %s249_s11, 16, %s251_s14, [#allocation5]  }
  0x13   : > { %770 = dma.hbm_to_vmem [thread:$0]  (!%p1161_p5), %s272_s17, 256, %s274_s20, [#allocation8], %s1063_s21, %s1063_s21, %s1064_s22  }
  0x14   : > { %s262_s11 = sshll.u32 %s1065_s10, 4  ;;  %s286_s15 = sshll.u32 %s1262_s4, 4  ;;  %s263_s11 = int_to_ptr.vmem [resolvable:$true] %s262_s11  ;;  %s287_s15 = int_to_ptr.hbm [resolvable:$true] %s286_s15 }
  0x15   : > { %s1066_s16 = smov [#allocation9]   ;;  %s35_s19 = sadd.s32 1, %s1055_s28 }
  0x16   : > { %s260_s9 = sshll.u32 %s1272_s2, 4  ;;  %s288_s17 = sshll.u32 %s1066_s16, 4  ;;  %s261_s9 = int_to_ptr.hbm [resolvable:$true] %s260_s9  ;;  %s289_s17 = int_to_ptr.vmem [resolvable:$true] %s288_s17 }
  0x17   : > { %767 = dma.hbm_to_vmem [thread:$0]  (!%p1161_p5), %s261_s9, 16, %s263_s11, [#allocation5]  }
  0x18   : > { %773 = dma.hbm_to_vmem [thread:$0]  (!%p1161_p5), %s287_s15, 16, %s289_s17, [#allocation8]  }
  0x19   : > { %s44_s20 = sadd.s32 1, %s1047_s26  ;;  %p37_p6 = scmp.ge.s32.totalorder %s35_s19, 2 }
  0x1a   : > { %p51_p7 = scmp.ne.s32.totalorder %s1047_s26, %s1043_s25  ;;  %p52_p8 = scmp.eq.s32.totalorder %s1059_s29, 0 }
  0x1b   : > { %p57_p9 = scmp.ne.s32.totalorder %s1043_s25, %s1039_s24  ;;  %s1281_s19 = smov (%p37_p6, %s35_s19), 0 }
  0x1c   : > { %p1188_p10 = por %p52_p8, %p51_p7  ;;  %s39_s22 = ssub.s32 %s1055_s28, %s1281_s19 }
  0x1d   : > { %p1194_p11 = por %p1142_p1, %p57_p9  ;;  %p782_p12 = scmp.lt.s32.totalorder %s1059_s29, 2 }
  0x1e   : > { %p42_p13 = scmp.eq.s32.totalorder %s39_s22, 0  ;;  %s299_s23 = sand.u32 1, %s1047_s26  }
  0x1f   : > { %s719_s30 = sshll.u32 %s299_s23, 3  ;;  %s720_s24 = sshll.u32 %s1055_s28, 3 }
  0x20   : > { %s1203_s9 = scalar_select %p42_p13, %s1047_s26, %s44_s20  }
  0x21   : > { %s308_s13 = scalar_lea.hbm %s1258_s0, %s720_s24  ;;  %s303_s14 = scalar_lea.vmem [#allocation2], %s719_s30 }
  0x22   : > { %s312_s15 = sshll.u32 %s303_s14, 4  ;;  %s310_s16 = sshll.u32 %s308_s13, 4  ;;  %s313_s15 = int_to_ptr.vmem [resolvable:$true] %s312_s15  ;;  %s311_s16 = int_to_ptr.hbm [resolvable:$true] %s310_s16 }
  0x23   : > { %p775_p0 = pnand %p782_p12, %p1188_p10  ;;  %s300_s17 = scalar_lea.sflag [#allocation3], %s299_s23 }
  0x24   : > { %321 = sbr.rel (%p1150_p3) target bundleno = 571 (0x23b), region = 40  ;;  %s323_s20 = sand.u32 (!%p1150_p3), 1, %s1043_s25  }
  0x25   : > { %777 = dma.hbm_to_vmem [thread:$0]  (!%p775_p0), %s311_s16, 128, %s313_s15, %s300_s17  }
  0x26   : > { %s722_s22 = sshll.u32 (!%p1150_p3), %s323_s20, 3  ;;  %s324_s1 = scalar_lea.sflag (!%p1150_p3), [#allocation3], %s323_s20 }
  0x27   : > { %s327_s2 = scalar_lea.vmem (!%p1150_p3), [#allocation2], %s722_s22 }
  0x29   : > { %1026 = dma.done.wait (%p1194_p11), %s324_s1, 128  }
  0x2a   : > { %1028 = vsyncadd (%p1194_p11), %s324_s1, 4294967168 }
  0x2b   : > { %1030 = dma.done.wait (%p1142_p1), [#allocation5], 32  }
  0x2c   : > { %1032 = vsyncadd (%p1142_p1), [#allocation5], 4294967264 }
  0x2d   : > { %1034 = dma.done.wait (%p1142_p1), [#allocation8], 272  }
  0x2e   : > { %1036 = vsyncadd (%p1142_p1), [#allocation8], 4294967024  ;;  %vm420_vm0 = vcmask 261120   ;;  %v417_v0 = vld [vmem:[%s327_s2] sm:$0xff]  ;;  %v1067_v2 = vmov 32.0   ;;  %v741_v15 = vld [vmem:[#allocation7] sm:$0xff] }
  0x2f   : > { %v421_v1 = vsel %vm420_vm0, %v417_v0, 0.0  ;;  %847 = vrcp.f32 %v1067_v2  ;;  %v742_v14 = vld [vmem:[#allocation7 + $0x8] sm:$0xff]  ;;  %v844_v25 = vld [vmem:[#allocation4] ss:$0 sm:$0xff]  ;;  %v845_v28 = vld [vmem:[#allocation6] ss:$0 sm:$0xff] }
  0x30   : > { %422 = vadd.xlane.f32.xlu0 %v421_v1  ;;  %488 = vmatpush.bf16.msra.mxu0 %v742_v14  ;;  %p395_p1 = scmp.lt.s32.totalorder %s1051_s27, 1  ;;  %v846_v32 = vld [vmem:[#allocation9] ss:$0 sm:$0xff]  ;;  %vm496_vm5 = vcmask 257024   ;;  %s1068_s21 = smov 96  }
  0x31   : > { %s1069_s18 = smov 64  }
  0x32   : > { %s1283_s27 = smov (!%p395_p1, %s1051_s27), 1 }
  0x33   : > { %s727_s1 = sshll.u32 %s1283_s27, 2 }
  0x34   : > { %489 = vmatpush.bf16.msra.mxu0 %v741_v15  ;;  %s401_s12 = scalar_lea.vmem %s1263_s5, %s727_s1  ;;  %s408_s24 = scalar_lea.vmem %s1264_s6, %s727_s1 }
  0x35   : > { %v848_v3 = vpop.eup %847  ;;  %s415_s11 = scalar_lea.vmem %s1265_s7, %s727_s1 }
  0x36   : > { %v425_v4 = vmul.f32 32.0, %v848_v3  ;;  %vm429_vm1 = vweird.f32 %v848_v3 }
  0x38   : > { %v426_v5 = vsub.f32 1.0, %v425_v4 }
  0x3a   : > { %v427_v6 = vmul.f32 %v848_v3, %v426_v5 }
  0x3c   : > { %v428_v7 = vadd.f32 %v848_v3, %v427_v6 }
  0x3e   : > { %v430_v8 = vsel %vm429_vm1, %v848_v3, %v428_v7 }
  0xa3   : > { %v423_v9 = vpop.xlane.xlu0 %422 }
  0xa4   : > { %v431_v10 = vmul.f32 %v430_v8, %v423_v9 }
  0xa6   : > { %v432_v11 = vsub.f32 %v417_v0, %v431_v10 }
  0xa8   : > { %v433_v12 = vmul.f32 %v432_v11, %v432_v11 }
  0xaa   : > { %v434_v13 = vsel %vm420_vm0, %v433_v12, 0.0 }
  0xab   : > { %435 = vadd.xlane.f32.xlu0 %v434_v13 }
 0x11e   : > { %v436_v16 = vpop.xlane.xlu0 %435 }
 0x11f   : > { %v437_v17 = vmul.f32 %v436_v16, %v430_v8 }
 0x121   : > { %v438_v18 = vadd.f32 1e-05, %v437_v17 }
 0x123   : > { %849 = vrsqrt.f32 %v438_v18  ;;  %vm445_vm3 = vweird.f32 %v438_v18 }
 0x129   : > { %v850_v19 = vpop.eup %849 }
 0x12a   : > { %v440_v20 = vmul.f32 %v850_v19, %v438_v18  ;;  %vm446_vm2 = vweird.f32 %v850_v19 }
 0x12b   : > { %vm447_vm4 = vmor %vm445_vm3, %vm446_vm2 }
 0x12c   : > { %v441_v21 = vmul.f32 %v850_v19, %v440_v20 }
 0x12e   : > { %v442_v22 = vmul.f32 0.5, %v441_v21 }
 0x130   : > { %v443_v23 = vsub.f32 1.5, %v442_v22 }
 0x132   : > { %v444_v24 = vmul.f32 %v850_v19, %v443_v23 }
 0x134   : > { %v448_v26 = vsel %vm447_vm4, %v850_v19, %v444_v24 }
 0x135   : > { %v449_v27 = vmul.f32 %v448_v26, %v432_v11 }
 0x137   : > { %v453_v29 = vmul.f32 %v844_v25, %v449_v27 }
 0x139   : > { %v457_v30 = vadd.f32 %v845_v28, %v453_v29 }
 0x13b   : > { %v458_v31 = vpack.c.bf16 %v457_v30, %v457_v30 }
 0x13d   : > { %738 = vmatmul.msk.bf16.vlgmr.msra.gmra.mxu0 %vm420_vm0, %v458_v31 }
 0x1ba   : > { %v491_v33 = vpop.f32.mrf.mxu0 }
 0x1bb   : > { %v492_v34 = vadd.f32 %v846_v32, %v491_v33 }
 0x1bd   : > { %v495_v35 = vpack.c.bf16 %v492_v34, %v492_v34 }
 0x1bf   : > { %499 = vrot.lane.b32.xlu1 %v495_v35, %s1068_s21  ;;  %497 = vst.msk [vmem:[%s401_s12] sm:$0xf] %vm496_vm5, %v495_v35 }
 0x1c2   : > { %v493_v36 = vpop.f32.mrf.mxu0 }
 0x1c7   : > { %503 = vrot.lane.b32.xlu1 %v495_v35, %s1069_s18 }
 0x231   : > { %v500_v37 = vpop.permute.xlu1 %499 }
 0x232   : > { %502 = vst.msk [vmem:[%s408_s24] sm:$0xf] %vm496_vm5, %v500_v37 }
 0x239   : > { %v504_v38 = vpop.permute.xlu1 %503 }
 0x23a   : > { %506 = vst.msk [vmem:[%s415_s11] sm:$0xf] %vm496_vm5, %v504_v38 }
 0x23b PF: > { %s23_s29 = sadd.s32 1, %s1059_s29   ;;  %s1275_s24 = smov %s1043_s25 }
 0x23c   : > { %p20_p2 = scmp.ge.s32.totalorder %s23_s29, 4   ;;  %s1276_s25 = smov %s1047_s26 }
 0x23d   : > { %s1277_s26 = smov %s1203_s9  ;;  %s1278_s27 = smov %s1055_s28 }
 0x23e   : > { %s1279_s28 = smov %s1281_s19  ;;  %22 = sbr.rel (!%p20_p2) target bundleno = 9 (0x9), region = 120 }
 0x243   :  { %572 = vsyncpa [#allocation3], 1 }
 0x244   :  { %574 = vsyncpa [#allocation3 + $0x1], 1 }
 0x245   :  { %575 = vsyncpa [#allocation5], 1 }
 0x246   :  { %576 = vsyncpa [#allocation8], 1 }

// kernel: block_forward.5
= control target key start
LH: loop header
LB: loop body
LE: loop exit
PB: predicated region body
PF: predicated region fallthrough
CT: control target
= control target key end

     0   :  { %s1033_s0 = inlined_call_operand.vmem [shape: f32[2,8,32], index: 0, kind: input, shape index: {}]   ;;  %s1034_s1 = inlined_call_operand.vmem [shape: f32[1,32], index: 1, kind: input, shape index: {}]   ;;  %s1035_s2 = inlined_call_operand.vmem [shape: f32[1,32], index: 2, kind: input, shape index: {}]   ;;  %s1036_s3 = inlined_call_operand.vmem [shape: bf16[32,128], index: 3, kind: input, shape index: {}]   ;;  %s1037_s4 = inlined_call_operand.vmem [shape: f32[1,128], index: 4, kind: input, shape index: {}]   ;;  %s1038_s5 = inlined_call_operand.vmem [shape: bf16[128,32], index: 5, kind: input, shape index: {}]   ;;  %s1039_s6 = inlined_call_operand.vmem [shape: f32[1,32], index: 6, kind: input, shape index: {}]   ;;  %s1040_s7 = inlined_call_operand.vmem [shape: f32[1,32], index: 7, kind: input, shape index: {}]   ;;  %s1041_s8 = inlined_call_operand.hbm [shape: f32[2,8,32], index: 8, kind: output, shape index: {}]  }
   0x1   :  { %1042 = sst [smem:[#allocation5_spill]] %s1033_s0 }
   0x2   :  { %13 = vsyncpa [#allocation3], 0 }
   0x3   :  { %15 = vsyncpa [#allocation3 + $0x1], 0  ;;  %s882_s27 = smov 0   ;;  %s884_s28 = smov 0  }
   0x4   :  { %s886_s29 = smov 0   ;;  %s888_s30 = smov 0  }
   0x5   :  { %s890_s9 = smov 0   ;;  %s892_s10 = smov 0  }
   0x6 LB: > { %s626_s11 = sadd.s32 4294967295, %s834_s10   ;;  %s627_s12 = sadd.s32 4294967294, %s834_s10   ;;  %s834_s10 = sphi %s892_s10, %s21_s10   ;;  %s830_s9 = sphi %s890_s9, %s1050_s9   ;;  %s826_s30 = sphi %s888_s30, %s1049_s30   ;;  %s822_s29 = sphi %s886_s29, %s1048_s29   ;;  %s818_s28 = sphi %s884_s28, %s1047_s28   ;;  %s814_s27 = sphi %s882_s27, %s1046_s27  }
   0x7   : > { %s33_s13 = sadd.s32 1, %s830_s9  ;;  %s217_s14 = sadd.s32 1, %s822_s29 }
   0x8   : > { %p35_p0 = scmp.ge.s32.totalorder %s33_s13, 2  ;;  %p227_p1 = scmp.ne.s32.totalorder %s822_s29, %s818_s28 }
   0x9   : > { %p228_p2 = scmp.eq.s32.totalorder %s626_s11, 1  ;;  %p233_p3 = scmp.ne.s32.totalorder %s818_s28, %s814_s27 }
   0xa   : > { %s1052_s13 = smov (%p35_p0, %s33_s13), 0  ;;  %p234_p5 = scmp.eq.s32.totalorder %s627_s12, 1 }
   0xb   : > { %p922_p4 = por %p228_p2, %p227_p1  ;;  %s212_s16 = ssub.s32 %s830_s9, %s1052_s13 }
   0xc   : > { %p630_p6 = scmp.ge.s32.totalorder %s834_s10, 1  ;;  %p215_p7 = scmp.eq.s32.totalorder %s212_s16, 0 }
   0xd   : > { %p929_p8 = por %p234_p5, %p233_p3  ;;  %p283_p9 = scmp.lt.s32.totalorder %s834_s10, 3 }
   0xe   : > { %s935_s18 = scalar_select %p215_p7, %s822_s29, %s217_s14  }
   0xf   : > { %p284_p10 = pnand %p630_p6, %p283_p9 }
  0x10   : > { %p319_p11 = scmp.lt.s32.totalorder (!%p284_p10), %s826_s30, 1  ;;  %s1045_s0 = sld [smem:[#allocation5_spill]] (!%p284_p10) }
  0x11   : > { %287 = sbr.rel (%p284_p10) target bundleno = 614 (0x266), region = 52  ;;  %s316_s26 = sand.u32 (!%p284_p10), 1, %s818_s28  }
  0x12   : > { %s631_s11 = sshll.u32 (!%p284_p10), %s316_s26, 3  ;;  %s676_s12 = sshll.u32 (!%p284_p10), %s826_s30, 3 }
  0x13   : > { %s318_s24 = scalar_lea.vmem (!%p284_p10), [#allocation2], %s631_s11 }
  0x14   : > { %s552_s25 = sshll.u32 (!%p284_p10), %s318_s24, 4  ;;  %s553_s25 = int_to_ptr.vmem [resolvable:$true] %s552_s25 }
  0x16   : > { %s320_s19 = scalar_select %p319_p11, %s826_s30, 1  ;;  %vm330_vm0 = vcmask 261120   ;;  %v836_v2 = vmov 32.0   ;;  %v680_v14 = vld [vmem:[%s1036_s3 + $0x8] sm:$0xff]  ;;  %v679_v15 = vld [vmem:[%s1036_s3] sm:$0xff]  ;;  %v688_v32 = vld [vmem:[%s1038_s5 + $0x38] sm:$0xff] }
  0x17   : > { %750 = vrcp.f32 %v836_v2  ;;  %398 = vmatpush.bf16.msra.mxu0 %v680_v14  ;;  %v745_v25 = vld [vmem:[%s1034_s1] ss:$0 sm:$0xff]  ;;  %518 = vmatpush.bf16.msra.mxu1 %v688_v32  ;;  %v687_v33 = vld [vmem:[%s1038_s5 + $0x30] sm:$0xff]  ;;  %v686_v35 = vld [vmem:[%s1038_s5 + $0x28] sm:$0xff]  ;;  %s539_s30 = scalar_lea.sflag [#allocation3], %s316_s26 }
  0x18   : > { %s632_s20 = sshll.u32 %s320_s19, 3  ;;  %v746_v28 = vld [vmem:[%s1035_s2] ss:$0 sm:$0xff]  ;;  %v684_v41 = vld [vmem:[%s1038_s5 + $0x18] sm:$0xff]  ;;  %v683_v45 = vld [vmem:[%s1038_s5 + $0x10] sm:$0xff]  ;;  %s776_s19 = scalar_lea.hbm %s1041_s8, 16 }
  0x19   : > { %s325_s23 = scalar_lea.vmem %s1045_s0, %s632_s20  ;;  %v747_v34 = vld [vmem:[%s1037_s4] ss:$0 sm:$0xff]  ;;  %v682_v50 = vld [vmem:[%s1038_s5 + $0x8] sm:$0xff] }
  0x1a   : > { %v942_v0 = vld [vmem:[%s325_s23] sm:$0xff]  ;;  %s550_s23 = scalar_lea.hbm %s1041_s8, %s676_s12 }
  0x1b   : > { %v331_v1 = vsel %vm330_vm0, %v942_v0, 0.0  ;;  %399 = vmatpush.bf16.msra.mxu0 %v679_v15  ;;  %519 = vmatpush.bf16.msra.mxu1 %v687_v33  ;;  %v685_v38 = vld [vmem:[%s1038_s5 + $0x20] sm:$0xff]  ;;  %s554_s0 = sshll.u32 %s550_s23, 4  ;;  %s555_s0 = int_to_ptr.hbm [resolvable:$true] %s554_s0 }
  0x1c   : > { %332 = vadd.xlane.f32.xlu0 %v331_v1  ;;  %v681_v54 = vld [vmem:[%s1038_s5] sm:$0xff]  ;;  %s770_s14 = sshra.s32 %s555_s0, 4  ;;  %s771_s14 = int_to_ptr.hbm [resolvable:$true] %s770_s14 }
  0x1d   : > { %v751_v3 = vpop.eup %750  ;;  %s772_s16 = scalar_lea.hbm %s771_s14, 8  ;;  %p777_p1 = scmp.lt.s32.totalorder %s771_s14, %s1041_s8 }
  0x1e   : > { %v335_v4 = vmul.f32 32.0, %v751_v3  ;;  %vm339_vm1 = vweird.f32 %v751_v3  ;;  %p773_p12 = scmp.ne.s32.totalorder %s771_s14, %s772_s16  ;;  %p778_p2 = scmp.lt.s32.totalorder %s776_s19, %s772_s16 }
  0x1f   : > { %520 = vmatpush.bf16.msra.mxu1 %v686_v35 }
  0x20   : > { %v336_v5 = vsub.f32 1.0, %v335_v4  ;;  %p774_p13 = pnand %p773_p12, %p922_p4  ;;  %p779_p3 = por %p778_p2, %p777_p1 }
  0x22   : > { %v337_v6 = vmul.f32 %v751_v3, %v336_v5  ;;  %p775_p0 = pneg %p774_p13 }
  0x23   : > { %521 = vmatpush.bf16.msra.mxu1 %v685_v38 }
  0x24   : > { %v338_v7 = vadd.f32 %v751_v3, %v337_v6  ;;  %p780_p5 = pnand %p779_p3, %p775_p0 }
  0x26   : > { %v340_v8 = vsel %vm339_vm1, %v751_v3, %v338_v7 }
  0x27   : > { %522 = vmatpush.bf16.msra.mxu1 %v684_v41 }
  0x2b   : > { %523 = vmatpush.bf16.msra.mxu1 %v683_v45 }
  0x2f   : > { %524 = vmatpush.bf16.msra.mxu1 %v682_v50 }
  0x33   : > { %525 = vmatpush.bf16.msra.mxu1 %v681_v54 }
  0x8f   : > { %v333_v9 = vpop.xlane.xlu0 %332 }
  0x90   : > { %v341_v10 = vmul.f32 %v340_v8, %v333_v9 }
  0x92   : > { %v342_v11 = vsub.f32 %v942_v0, %v341_v10 }
  0x94   : > { %v343_v12 = vmul.f32 %v342_v11, %v342_v11 }
  0x96   : > { %v344_v13 = vsel %vm330_vm0, %v343_v12, 0.0 }
  0x97   : > { %345 = vadd.xlane.f32.xlu0 %v344_v13 }
 0x10a   : > { %v346_v16 = vpop.xlane.xlu0 %345 }
 0x10b   : > { %v347_v17 = vmul.f32 %v346_v16, %v340_v8 }
 0x10d   : > { %v348_v18 = vadd.f32 1e-05, %v347_v17 }
 0x10f   : > { %752 = vrsqrt.f32 %v348_v18  ;;  %vm355_vm3 = vweird.f32 %v348_v18 }
 0x115   : > { %v753_v19 = vpop.eup %752 }
 0x116   : > { %v350_v20 = vmul.f32 %v753_v19, %v348_v18  ;;  %vm356_vm2 = vweird.f32 %v753_v19 }
 0x117   : > { %vm357_vm4 = vmor %vm355_vm3, %vm356_vm2 }
 0x118   : > { %v351_v21 = vmul.f32 %v753_v19, %v350_v20 }
 0x11a   : > { %v352_v22 = vmul.f32 0.5, %v351_v21  ;;  %v748_v21 = vld [vmem:[%s1039_s6] ss:$0 sm:$0xff] }
 0x11c   : > { %v353_v23 = vsub.f32 1.5, %v352_v22  ;;  %v749_v22 = vld [vmem:[%s1040_s7] ss:$0 sm:$0xff] }
 0x11e   : > { %v354_v24 = vmul.f32 %v753_v19, %v353_v23 }
 0x120   : > { %v358_v26 = vsel %vm357_vm4, %v753_v19, %v354_v24 }
 0x121   : > { %v359_v27 = vmul.f32 %v358_v26, %v342_v11 }
 0x123   : > { %v363_v29 = vmul.f32 %v745_v25, %v359_v27 }
 0x125   : > { %v367_v30 = vadd.f32 %v746_v28, %v363_v29 }
 0x127   : > { %v368_v31 = vpack.c.bf16 %v367_v30, %v367_v30 }
 0x129   : > { %641 = vmatmul.msk.bf16.vlgmr.msra.gmra.mxu0 %vm330_vm0, %v368_v31 }
 0x1a6   : > { %v401_v36 = vpop.f32.mrf.mxu0 }
 0x1a7   : > { %v402_v37 = vadd.f32 %v747_v34, %v401_v36 }
 0x1a9   : > { %v406_v39 = vmul.f32 0.70710677, %v402_v37  ;;  %v405_v17 = vmul.f32 0.5, %v402_v37 }
 0x1ab   : > { %v407_v40 = vmul.f32 %v406_v39, %v406_v39 }
 0x1ad   : > { %v408_v42 = vmin.f32 %v407_v40, 16.0 }
 0x1ae   : > { %v403_v43 = vpop.f32.mrf.mxu0 }
 0x1af   : > { %v409_v44 = vmul.f32 2.1237322e-06, %v408_v42  ;;  %v420_v46 = vmul.f32 3.8918573e-05, %v408_v42 }
 0x1b1   : > { %v410_v47 = vadd.f32 0.00028619796, %v409_v44  ;;  %v421_v48 = vadd.f32 0.001143296, %v420_v46 }
 0x1b3   : > { %v411_v49 = vmul.f32 %v410_v47, %v408_v42  ;;  %v422_v51 = vmul.f32 %v421_v48, %v408_v42 }
 0x1b5   : > { %v423_v52 = vadd.f32 0.014752088, %v422_v51  ;;  %v412_v53 = vadd.f32 0.0036580483, %v411_v49 }
 0x1b7   : > { %v424_v55 = vmul.f32 %v423_v52, %v408_v42  ;;  %v413_v57 = vmul.f32 %v412_v53, %v408_v42 }
 0x1b9   : > { %v425_v56 = vadd.f32 0.112945676, %v424_v55  ;;  %v414_v60 = vadd.f32 0.05243302, %v413_v57 }
 0x1bb   : > { %v426_v58 = vmul.f32 %v425_v56, %v408_v42  ;;  %v415_v63 = vmul.f32 %v414_v60, %v408_v42 }
 0x1bd   : > { %v427_v59 = vadd.f32 0.4994258, %v426_v58  ;;  %v416_v1 = vadd.f32 0.18741608, %v415_v63 }
 0x1bf   : > { %v428_v61 = vmul.f32 %v427_v59, %v408_v42  ;;  %v417_v3 = vmul.f32 %v416_v1, %v408_v42 }
 0x1c1   : > { %v429_v62 = vadd.f32 1.0, %v428_v61  ;;  %v418_v7 = vadd.f32 1.1283791, %v417_v3 }
 0x1c3   : > { %754 = vrcp.f32 %v429_v62  ;;  %v441_v6 = vand.u32 2147483648, %v429_v62  ;;  %v439_v9 = vand.u32 2147483647, %v429_v62  ;;  %vm435_vm6 = vweird.f32 %v429_v62 }
 0x1c4   : > { %v419_v12 = vmul.f32 %v418_v7, %v406_v39 }
 0x1c5   : > { %v442_v11 = vor.u32 1.1754944e-38, %v441_v6  ;;  %vm440_vm8 = vcmp.eq.f32.partialorder %v439_v9, 8.507059e+37 }
 0x1c9   : > { %v755_v2 = vpop.eup %754 }
 0x1ca   : > { %v431_v4 = vmul.f32 %v755_v2, %v429_v62  ;;  %vm436_vm5 = vweird.f32 %v755_v2 }
 0x1cb   : > { %vm437_vm7 = vmor %vm435_vm6, %vm436_vm5 }
 0x1cc   : > { %v432_v5 = vsub.f32 1.0, %v431_v4 }
 0x1ce   : > { %v433_v8 = vmul.f32 %v755_v2, %v432_v5 }
 0x1d0   : > { %v434_v10 = vadd.f32 %v755_v2, %v433_v8 }
 0x1d2   : > { %v438_v13 = vsel %vm437_vm7, %v755_v2, %v434_v10 }
 0x1d3   : > { %v443_v14 = vsel %vm440_vm8, %v442_v11, %v438_v13 }
 0x1d4   : > { %v444_v15 = vmul.f32 %v443_v14, %v419_v12 }
 0x1d6   : > { %v642_v16 = vclamps-f32 %v444_v15, 1.0 }
 0x1d8   : > { %v447_v18 = vadd.f32 1.0, %v642_v16 }
 0x1da   : > { %v448_v19 = vmul.f32 %v447_v18, %v405_v17 }
 0x1dc   : > { %v449_v20 = vpack.c.bf16 %v448_v19, %v448_v19 }
 0x1de   : > { %526 = vmatmul.bf16.vlgmr.msra.gmra.mxu1 %v449_v20 }
 0x25b   : > { %v527_v23 = vpop.f32.mrf.mxu1 }
 0x25c   : > { %v528_v24 = vadd.f32 %v748_v21, %v527_v23 }
 0x25e   : > { %v535_v25 = vmul.f32 %v749_v22, %v528_v24 }
 0x260   : > { %v536_v26 = vadd.f32 %v535_v25, %v942_v0 }
 0x262   : > { %537 = vst.msk [vmem:[%s318_s24] sm:$0xff] %vm330_vm0, %v536_v26 }
 0x263   : > { %v529_v27 = vpop.f32.mrf.mxu1 }
 0x264   : > { %783 = shalt.err (!%p780_p5)
}
 0x265   : > { %689 = dma.vmem_to_hbm [thread:$0]  (%p922_p4), %s553_s25, 128, %s555_s0, %s539_s30  }
 0x266 PF: > { %p695_p6 = scmp.ge.s32.totalorder %s834_s10, 2  ;;  %s566_s26 = sand.u32 1, %s814_s27  }
 0x267   : > { %s567_s22 = scalar_lea.sflag [#allocation3], %s566_s26 }
 0x268   : > { %p692_p7 = pnand %p695_p6, %p929_p8 }
 0x26a   : > { %p693_p9 = pneg %p692_p7 }
 0x26c   : > { %809 = dma.done.wait (%p693_p9), %s567_s22, 128  }
 0x26d   : > { %811 = vsyncadd (%p693_p9), %s567_s22, 4294967168  ;;  %s21_s10 = sadd.s32 1, %s834_s10   ;;  %s1046_s27 = smov %s818_s28 }
 0x26e   : > { %p18_p10 = scmp.ge.s32.totalorder %s21_s10, 4   ;;  %s1047_s28 = smov %s822_s29 }
 0x26f   : > { %s1048_s29 = smov %s935_s18  ;;  %s1049_s30 = smov %s830_s9 }
 0x270   : > { %s1050_s9 = smov %s1052_s13  ;;  %20 = sbr.rel (!%p18_p10) target bundleno = 6 (0x6), region = 87 }
 0x275   :  { %573 = vsyncpa [#allocation3], 1 }
 0x276   :  { %575 = vsyncpa [#allocation3 + $0x1], 1 }

</bundles_post_ra>
